<compile_context>
chip_gen: v7x
topology: tpu7x:2x2x1
jax: 0.10.0
libtpu: 0.0.40
codegen_flags: <defaults>
</compile_context>

<pallas_src>
import functools

import jax
import jax.numpy as jnp
from jax.experimental import pallas as pl
from jax.experimental.pallas import tpu as pltpu


def transformer_block_kernel(
    v_ref, k_ref, q_ref, m_ref,
    wv_ref, bv_ref, wk_ref, bk_ref, wq_ref, bq_ref, wo_ref, bo_ref,
    g1_ref, be1_ref, w1_ref, b1_ref, w2_ref, b2_ref, g2_ref, be2_ref,
    o_ref, kp_sc, vp_sc,
    *, heads, head_dim, mask_fill, compute_dtype, ln_eps, approx_recip):
  f32 = jnp.float32
  cdt = compute_dtype
  H, hd = heads, head_dim
  Bt, Lq, E = q_ref.shape
  Lk = k_ref.shape[1]
  rows_q = Bt * Lq
  rows_k = Bt * Lk

  def split_heads(x2d, L):
    # (Bt*L, E) -> (H*Bt, L, hd).  Lane slices stacked along a new major axis
    # (a handful of relayouts; hides under MXU work).  Avoids minor-dim
    # reshapes / sublane transposes.
    x3 = x2d.reshape(Bt, L, E)
    xh = jnp.stack([x3[:, :, h * hd:(h + 1) * hd] for h in range(H)], axis=0)
    return xh.reshape(H * Bt, L, hd)

  # ---- K/V projections: full-width (Bt*Lk, E) @ (E, E) matmuls, done ONCE
  # per batch tile (query axis iterates innermost) and kept in VMEM scratch.
  @pl.when(pl.program_id(1) == 0)
  def _project_kv():
    k2d = k_ref[...].reshape(rows_k, E)
    v2d = v_ref[...].reshape(rows_k, E)
    kp = jnp.dot(k2d, wk_ref[...], preferred_element_type=f32) + bk_ref[...]
    vp = jnp.dot(v2d, wv_ref[...], preferred_element_type=f32) + bv_ref[...]
    kp_sc[...] = kp.astype(kp_sc.dtype)
    vp_sc[...] = vp.astype(vp_sc.dtype)

  # ---- Q projection: full-width matmul; 1/sqrt(E) folded into wq/bq. -------
  q_res = q_ref[...].astype(f32).reshape(rows_q, E)        # f32 residual copy
  qp = jnp.dot(q_res.astype(cdt), wq_ref[...],
               preferred_element_type=f32) + bq_ref[...]

  qh = split_heads(qp.astype(cdt), Lq)                     # (H*Bt, Lq, hd)
  kh = split_heads(kp_sc[...], Lk)                         # (H*Bt, Lk, hd)
  vh = split_heads(vp_sc[...], Lk)                         # (H*Bt, Lk, hd)

  # ---- attention: single leading-batch einsums over the fused (H*Bt) axis --
  # TODO(synk): switch to a KV grid axis + online softmax for large Lk.
  energy = jnp.einsum('bqd,bkd->bqk', qh, kh,
                      preferred_element_type=f32)          # (H*Bt, Lq, Lk)
  e4 = energy.reshape(H, Bt, Lq, Lk)
  masked = (m_ref[...].reshape(Bt, Lq, Lk).astype(jnp.int32) == 0)
  e4 = jnp.where(masked[None], jnp.float32(mask_fill), e4)

  # Numerically stable softmax over keys (f32).
  e4 = e4 - jnp.max(e4, axis=-1, keepdims=True)
  p = jnp.exp(e4)
  attn = p * pl.reciprocal(jnp.sum(p, axis=-1, keepdims=True),
                           approx=approx_recip)

  ctx = jnp.einsum('bqk,bkd->bqd',
                   attn.reshape(H * Bt, Lq, Lk).astype(cdt), vh,
                   preferred_element_type=f32)             # (H*Bt, Lq, hd)

  # ---- merge heads (one lane concat) + full-width fc_out -------------------
  ctx4 = ctx.astype(cdt).reshape(H, Bt, Lq, hd)
  ctx2d = jnp.concatenate([ctx4[h] for h in range(H)],
                          axis=-1).reshape(rows_q, E)      # (Bt*Lq, E)
  attn_out = jnp.dot(ctx2d, wo_ref[...],
                     preferred_element_type=f32) + bo_ref[...]

  # ---- residual + LayerNorm + FFN + residual + LayerNorm (f32 slab) --------
  x = attn_out + q_res
  mu = jnp.mean(x, axis=-1, keepdims=True)
  xc = x - mu
  var = jnp.mean(xc * xc, axis=-1, keepdims=True)
  x = xc * jax.lax.rsqrt(var + ln_eps) * g1_ref[...] + be1_ref[...]
  # dropout: identity (eval mode)

  h1 = jnp.dot(x.astype(cdt), w1_ref[...],
               preferred_element_type=f32) + b1_ref[...]
  h1 = jnp.maximum(h1, 0.0)
  y = jnp.dot(h1.astype(cdt), w2_ref[...],
              preferred_element_type=f32) + b2_ref[...]
  y = y + x
  mu2 = jnp.mean(y, axis=-1, keepdims=True)
  yc = y - mu2
  var2 = jnp.mean(yc * yc, axis=-1, keepdims=True)
  y = yc * jax.lax.rsqrt(var2 + ln_eps) * g2_ref[...] + be2_ref[...]
  # dropout: identity (eval mode)

  o_ref[...] = y.reshape(Bt, Lq, E).astype(o_ref.dtype)


def _largest_divisors(n, cap):
  return [d for d in range(min(n, cap), 0, -1) if n % d == 0]


def _vmem_capacity_bytes():
  # Generation-aware VMEM capacity (v5e/v6e: 128 MiB, v7x: 64 MiB per core).
  try:
    return int(pltpu.get_tpu_info().vmem_capacity_bytes)
  except Exception:
    return 64 * 2**20   # conservative fallback


def _estimate_vmem_bytes(bb, qb, Lk, E, FE, heads, act_itemsize, param_bytes):
  rows, rk = bb * qb, bb * Lk
  io = 2 * (2 * rk * E * act_itemsize      # k + v input blocks (double-buffered)
            + rows * E * 4                 # q block (f32)
            + bb * qb * Lk                 # int8 mask block
            + rows * E * 4)                # output block
  scratch = 2 * rk * E * act_itemsize      # resident projected K / V
  temps = (2 * heads * bb * qb * Lk * 4    # energy + probabilities (f32)
           + (2 * rk + rows) * E * 4       # qp / kp / vp f32 temporaries
           + rows * FE * 4                 # FFN hidden activation (f32)
           + 4 * rows * E * 4)             # ctx / attn_out / x / y slabs
  return io + scratch + temps + 2 * param_bytes


def _pick_tiles(N, Lq, Lk, E, FE, heads, act_itemsize, param_bytes, vmem_cap,
                batch_block, q_block):
  small_vmem = vmem_cap <= 64 * 2**20
  b_cap = 2 if small_vmem else 4
  q_cap = 128 if (small_vmem and Lk >= 512) else 256
  b_cands = [batch_block] if batch_block is not None else _largest_divisors(N, b_cap)
  q_cands = [q_block] if q_block is not None else _largest_divisors(Lq, q_cap)
  budget = int(0.6 * vmem_cap)

  def est(p):
    return _estimate_vmem_bytes(p[0], p[1], Lk, E, FE, heads, act_itemsize,
                                param_bytes)

  pairs = [(bb, qb) for bb in b_cands for qb in q_cands]
  fitting = [p for p in pairs if est(p) <= budget]
  if fitting:
    return max(fitting, key=lambda p: (p[0] * p[1], p[1]))
  return min(pairs, key=est)


def _prep_params(params, *, embed_size, forward_expansion, compute_dtype):
  """Reshape torch-convention (out, in) weights into kernel layouts (host)."""
  E = embed_size
  FE = forward_expansion * E
  f32, cdt = jnp.float32, compute_dtype
  scale = 1.0 / (E ** 0.5)
  wv = params["wv"].T.astype(cdt)                       # (E, E)
  bv = params["bv"].reshape(1, E).astype(f32)
  wk = params["wk"].T.astype(cdt)
  bk = params["bk"].reshape(1, E).astype(f32)
  wq = (params["wq"] * scale).T.astype(cdt)             # 1/sqrt(E) folded in
  bq = (params["bq"] * scale).reshape(1, E).astype(f32)
  wo = params["wo"].T.astype(cdt)
  bo = params["bo"].reshape(1, E).astype(f32)
  g1 = params["g1"].reshape(1, E).astype(f32)
  be1 = params["be1"].reshape(1, E).astype(f32)
  w1 = params["w1"].T.astype(cdt)                       # (E, FE)
  b1 = params["b1"].reshape(1, FE).astype(f32)
  w2 = params["w2"].T.astype(cdt)                       # (FE, E)
  b2 = params["b2"].reshape(1, E).astype(f32)
  g2 = params["g2"].reshape(1, E).astype(f32)
  be2 = params["be2"].reshape(1, E).astype(f32)
  return (wv, bv, wk, bk, wq, bq, wo, bo, g1, be1, w1, b1, w2, b2, g2, be2)


def transformer_block(value, key, query, mask, params, *, embed_size, heads,
                      forward_expansion, compute_dtype=jnp.bfloat16,
                      batch_block=None, q_block=None, ln_eps=1e-5):
  """value/key/query: (N, L, E) f32; mask: (N, 1, Lq, Lk), 0 == masked."""
  N, Lq, E = query.shape
  Lk = key.shape[1]
  Lv = value.shape[1]
  H = heads
  hd = E // H
  FE = forward_expansion * E
  assert E == embed_size and hd * H == E
  assert Lv == Lk, "attention requires value_len == key_len"
  assert mask.shape == (N, 1, Lq, Lk)

  prepped = _prep_params(params, embed_size=E,
                         forward_expansion=forward_expansion,
                         compute_dtype=compute_dtype)
  param_bytes = sum(int(p.size) * p.dtype.itemsize for p in prepped)
  act_itemsize = jnp.dtype(compute_dtype).itemsize
  vmem_cap = _vmem_capacity_bytes()

  batch_block, q_block = _pick_tiles(N, Lq, Lk, E, FE, H, act_itemsize,
                                     param_bytes, vmem_cap,
                                     batch_block, q_block)
  assert N % batch_block == 0 and Lq % q_block == 0

  # K/V shipped pre-cast to the compute dtype (halves their HBM traffic and
  # VMEM footprint on the bf16 path); query stays f32 for residual/LayerNorm.
  value = value.astype(compute_dtype)
  key = key.astype(compute_dtype)
  mask_i8 = (mask != 0).astype(jnp.int8)     # 4x less HBM traffic than f32

  grid = (N // batch_block, Lq // q_block)

  def const_spec(shape):
    zeros = (0,) * len(shape)
    return pl.BlockSpec(shape, lambda b, q, _z=zeros: _z)

  in_specs = [
      pl.BlockSpec((batch_block, Lv, E), lambda b, q: (b, 0, 0)),           # values
      pl.BlockSpec((batch_block, Lk, E), lambda b, q: (b, 0, 0)),           # keys
      pl.BlockSpec((batch_block, q_block, E), lambda b, q: (b, q, 0)),      # query
      pl.BlockSpec((batch_block, 1, q_block, Lk), lambda b, q: (b, 0, q, 0)),  # mask
  ] + [const_spec(p.shape) for p in prepped]

  kernel = functools.partial(
      transformer_block_kernel, heads=H, head_dim=hd,
      mask_fill=-1e20 / (E ** 0.5),   # matches torch fill-then-scale order
      compute_dtype=compute_dtype, ln_eps=float(ln_eps),
      approx_recip=(jnp.dtype(compute_dtype) != jnp.dtype(jnp.float32)))

  est = _estimate_vmem_bytes(batch_block, q_block, Lk, E, FE, H,
                             act_itemsize, param_bytes)
  headroom = 8 * 2**20 if vmem_cap <= 64 * 2**20 else 16 * 2**20
  upper = max(vmem_cap - headroom, 16 * 2**20)
  vmem_limit = int(min(upper, max(min(32 * 2**20, upper), int(1.3 * est))))

  return pl.pallas_call(
      kernel,
      out_shape=jax.ShapeDtypeStruct((N, Lq, E), query.dtype),
      grid_spec=pltpu.PrefetchScalarGridSpec(
          num_scalar_prefetch=0,
          grid=grid,
          in_specs=in_specs,
          out_specs=pl.BlockSpec((batch_block, q_block, E),
                                 lambda b, q: (b, q, 0)),
          scratch_shapes=[
              pltpu.VMEM((batch_block * Lk, E), compute_dtype),  # projected K
              pltpu.VMEM((batch_block * Lk, E), compute_dtype),  # projected V
          ]),
      compiler_params=pltpu.CompilerParams(
          # Batch axis parallel (megacore shards batch so each core keeps its
          # K/V blocks + projected-K/V scratch resident across the q steps).
          dimension_semantics=("parallel", "arbitrary"),
          vmem_limit_bytes=vmem_limit),
  )(value, key, query, mask_i8, *prepped)


def reference(value, key, query, mask, params, *, embed_size, heads,
              ln_eps=1e-5):
  """Pure-JAX f32 reference mirroring the PyTorch TransformerBlock.forward."""
  N, Lq, E = query.shape
  hd = embed_size // heads

  def linear(x, w, b):            # torch convention: y = x @ W.T + b
    return jnp.einsum("nli,oi->nlo", x, w) + b

  v = linear(value, params["wv"], params["bv"]).reshape(N, -1, heads, hd)
  k = linear(key, params["wk"], params["bk"]).reshape(N, -1, heads, hd)
  q = linear(query, params["wq"], params["bq"]).reshape(N, -1, heads, hd)

  energy = jnp.einsum("nqhd,nkhd->nhqk", q, k)
  energy = jnp.where(mask == 0, jnp.float32(-1e20), energy)
  attn = jax.nn.softmax(energy / (embed_size ** 0.5), axis=3)
  ctx = jnp.einsum("nhqk,nkhd->nqhd", attn, v).reshape(N, Lq, E)
  attn_out = jnp.einsum("nli,oi->nlo", ctx, params["wo"]) + params["bo"]

  def layer_norm(x, g, b):
    mu = x.mean(-1, keepdims=True)
    var = ((x - mu) ** 2).mean(-1, keepdims=True)
    return (x - mu) / jnp.sqrt(var + ln_eps) * g + b

  x = layer_norm(attn_out + query, params["g1"], params["be1"])
  h = jax.nn.relu(jnp.einsum("nli,oi->nlo", x, params["w1"]) + params["b1"])
  f = jnp.einsum("nli,oi->nlo", h, params["w2"]) + params["b2"]
  return layer_norm(f + x, params["g2"], params["be2"])


if __name__ == "__main__":
  embed_size, heads, forward_expansion = 32, 4, 4
  N, L = 2, 8
  E, FE = embed_size, forward_expansion * embed_size

  rng = jax.random.PRNGKey(0)
  ks = jax.random.split(rng, 20)
  s = 1.0 / (E ** 0.5)
  sf = 1.0 / (FE ** 0.5)
  u = lambda k, shape, lim: jax.random.uniform(k, shape, jnp.float32, -lim, lim)

  params = {
      "wq": u(ks[0], (E, E), s), "bq": u(ks[1], (E,), s),
      "wk": u(ks[2], (E, E), s), "bk": u(ks[3], (E,), s),
      "wv": u(ks[4], (E, E), s), "bv": u(ks[5], (E,), s),
      "wo": u(ks[6], (E, E), s), "bo": u(ks[7], (E,), s),
      "g1": 1.0 + u(ks[8], (E,), 0.1), "be1": u(ks[9], (E,), 0.1),
      "w1": u(ks[10], (FE, E), s), "b1": u(ks[11], (FE,), s),
      "w2": u(ks[12], (E, FE), sf), "b2": u(ks[13], (E,), sf),
      "g2": 1.0 + u(ks[14], (E,), 0.1), "be2": u(ks[15], (E,), 0.1),
  }

  value = jax.random.normal(ks[16], (N, L, E), jnp.float32)
  key_in = jax.random.normal(ks[17], (N, L, E), jnp.float32)
  query = jax.random.normal(ks[18], (N, L, E), jnp.float32)

  # causal mask broadcast over heads: (N, 1, Lq, Lk), 0 == masked out
  causal = jnp.tril(jnp.ones((L, L), jnp.float32))
  mask = jnp.broadcast_to(causal, (N, 1, L, L))

  ref = reference(value, key_in, query, mask, params,
                  embed_size=embed_size, heads=heads)

  # Exact f32 path: tight check against the pure-JAX reference.
  out_f32 = transformer_block(value, key_in, query, mask, params,
                              embed_size=embed_size, heads=heads,
                              forward_expansion=forward_expansion,
                              compute_dtype=jnp.float32)
  out_f32 = jax.block_until_ready(out_f32)
  assert out_f32.shape == (N, L, E)
  err32 = float(jnp.max(jnp.abs(out_f32 - ref)))
  assert jnp.allclose(out_f32, ref, atol=1e-4, rtol=1e-4), err32

  # Fast bf16-MXU path (f32 accumulation / softmax / LayerNorm): looser check.
  out_bf16 = transformer_block(value, key_in, query, mask, params,
                               embed_size=embed_size, heads=heads,
                               forward_expansion=forward_expansion,
                               compute_dtype=jnp.bfloat16)
  out_bf16 = jax.block_until_ready(out_bf16)
  errbf = float(jnp.max(jnp.abs(out_bf16 - ref)))
  assert jnp.allclose(out_bf16, ref, atol=7e-2, rtol=7e-2), errbf

  print("KERNEL_OK")
</pallas_src>

<mosaic_0001>
module attributes {stable_mosaic.version = 11 : i64} {
  func.func @transformer_block_kernel(%arg0: i32, %arg1: i32, %arg2: memref<2x8x32xf32, #tpu.memory_space<vmem>>, %arg3: memref<2x8x32xf32, #tpu.memory_space<vmem>>, %arg4: memref<2x8x32xf32, #tpu.memory_space<vmem>>, %arg5: memref<2x1x8x8xi8, #tpu.memory_space<vmem>>, %arg6: memref<32x32xf32, #tpu.memory_space<vmem>>, %arg7: memref<1x32xf32, #tpu.memory_space<vmem>>, %arg8: memref<32x32xf32, #tpu.memory_space<vmem>>, %arg9: memref<1x32xf32, #tpu.memory_space<vmem>>, %arg10: memref<32x32xf32, #tpu.memory_space<vmem>>, %arg11: memref<1x32xf32, #tpu.memory_space<vmem>>, %arg12: memref<32x32xf32, #tpu.memory_space<vmem>>, %arg13: memref<1x32xf32, #tpu.memory_space<vmem>>, %arg14: memref<1x32xf32, #tpu.memory_space<vmem>>, %arg15: memref<1x32xf32, #tpu.memory_space<vmem>>, %arg16: memref<32x128xf32, #tpu.memory_space<vmem>>, %arg17: memref<1x128xf32, #tpu.memory_space<vmem>>, %arg18: memref<128x32xf32, #tpu.memory_space<vmem>>, %arg19: memref<1x32xf32, #tpu.memory_space<vmem>>, %arg20: memref<1x32xf32, #tpu.memory_space<vmem>>, %arg21: memref<1x32xf32, #tpu.memory_space<vmem>>, %arg22: memref<2x8x32xf32, #tpu.memory_space<vmem>>, %arg23: memref<16x32xf32, #tpu.memory_space<vmem>>, %arg24: memref<16x32xf32, #tpu.memory_space<vmem>>) attributes {dimension_semantics = [#tpu.dimension_semantics<parallel>, #tpu.dimension_semantics<arbitrary>], iteration_bounds = array<i64: 1, 1>, scalar_prefetch = 0 : i64, scratch_operands = 2 : i64, tpu.core_type = #tpu.core_type<tc>, window_params = [{transform_indices = @transform_0, window_bounds = array<i64: 2, 8, 32>}, {transform_indices = @transform_1, window_bounds = array<i64: 2, 8, 32>}, {transform_indices = @transform_2, window_bounds = array<i64: 2, 8, 32>}, {transform_indices = @transform_3, window_bounds = array<i64: 2, 1, 8, 8>}, {pipeline_mode = #tpu.pipeline_mode<synchronous>, transform_indices = @transform_4, window_bounds = array<i64: 32, 32>}, {pipeline_mode = #tpu.pipeline_mode<synchronous>, transform_indices = @transform_5, window_bounds = array<i64: 1, 32>}, {pipeline_mode = #tpu.pipeline_mode<synchronous>, transform_indices = @transform_6, window_bounds = array<i64: 32, 32>}, {pipeline_mode = #tpu.pipeline_mode<synchronous>, transform_indices = @transform_7, window_bounds = array<i64: 1, 32>}, {pipeline_mode = #tpu.pipeline_mode<synchronous>, transform_indices = @transform_8, window_bounds = array<i64: 32, 32>}, {pipeline_mode = #tpu.pipeline_mode<synchronous>, transform_indices = @transform_9, window_bounds = array<i64: 1, 32>}, {pipeline_mode = #tpu.pipeline_mode<synchronous>, transform_indices = @transform_10, window_bounds = array<i64: 32, 32>}, {pipeline_mode = #tpu.pipeline_mode<synchronous>, transform_indices = @transform_11, window_bounds = array<i64: 1, 32>}, {pipeline_mode = #tpu.pipeline_mode<synchronous>, transform_indices = @transform_12, window_bounds = array<i64: 1, 32>}, {pipeline_mode = #tpu.pipeline_mode<synchronous>, transform_indices = @transform_13, window_bounds = array<i64: 1, 32>}, {pipeline_mode = #tpu.pipeline_mode<synchronous>, transform_indices = @transform_14, window_bounds = array<i64: 32, 128>}, {pipeline_mode = #tpu.pipeline_mode<synchronous>, transform_indices = @transform_15, window_bounds = array<i64: 1, 128>}, {pipeline_mode = #tpu.pipeline_mode<synchronous>, transform_indices = @transform_16, window_bounds = array<i64: 128, 32>}, {pipeline_mode = #tpu.pipeline_mode<synchronous>, transform_indices = @transform_17, window_bounds = array<i64: 1, 32>}, {pipeline_mode = #tpu.pipeline_mode<synchronous>, transform_indices = @transform_18, window_bounds = array<i64: 1, 32>}, {pipeline_mode = #tpu.pipeline_mode<synchronous>, transform_indices = @transform_19, window_bounds = array<i64: 1, 32>}, {transform_indices = @transform_20, window_bounds = array<i64: 2, 8, 32>}]} {
    %c0_i32 = arith.constant 0 : i32
    %0 = arith.cmpi eq, %arg1, %c0_i32 : i32
    %1 = arith.extui %0 : i1 to i32
    %c0_i32_0 = arith.constant 0 : i32
    %2 = arith.cmpi ne, %1, %c0_i32_0 : i32
    scf.if %2 {
      %c0_58 = arith.constant 0 : index
      %c0_59 = arith.constant 0 : index
      %c0_60 = arith.constant 0 : index
      %145 = vector.load %arg3[%c0_58, %c0_59, %c0_60] : memref<2x8x32xf32, #tpu.memory_space<vmem>>, vector<2x8x32xf32>
      %146 = vector.shape_cast %145 : vector<2x8x32xf32> to vector<16x32xf32>
      %c0_61 = arith.constant 0 : index
      %c0_62 = arith.constant 0 : index
      %c0_63 = arith.constant 0 : index
      %147 = vector.load %arg2[%c0_61, %c0_62, %c0_63] : memref<2x8x32xf32, #tpu.memory_space<vmem>>, vector<2x8x32xf32>
      %148 = vector.shape_cast %147 : vector<2x8x32xf32> to vector<16x32xf32>
      %c0_64 = arith.constant 0 : index
      %c0_65 = arith.constant 0 : index
      %149 = vector.load %arg8[%c0_64, %c0_65] : memref<32x32xf32, #tpu.memory_space<vmem>>, vector<32x32xf32>
      %cst_66 = arith.constant dense<0.000000e+00> : vector<16x32xf32>
      %150 = tpu.matmul %146, %149, %cst_66 {dimension_numbers = #tpu.dot_dimension_numbers<[1], [0], [0], [1], [0, 0, 1, 1], [], []>} : vector<16x32xf32>, vector<32x32xf32>, vector<16x32xf32> -> vector<16x32xf32>
      %c0_67 = arith.constant 0 : index
      %c0_68 = arith.constant 0 : index
      %151 = vector.load %arg9[%c0_67, %c0_68] : memref<1x32xf32, #tpu.memory_space<vmem>>, vector<1x32xf32>
      %152 = vector.broadcast %151 : vector<1x32xf32> to vector<16x32xf32>
      %153 = arith.addf %150, %152 : vector<16x32xf32>
      %c0_69 = arith.constant 0 : index
      %c0_70 = arith.constant 0 : index
      %154 = vector.load %arg6[%c0_69, %c0_70] : memref<32x32xf32, #tpu.memory_space<vmem>>, vector<32x32xf32>
      %cst_71 = arith.constant dense<0.000000e+00> : vector<16x32xf32>
      %155 = tpu.matmul %148, %154, %cst_71 {dimension_numbers = #tpu.dot_dimension_numbers<[1], [0], [0], [1], [0, 0, 1, 1], [], []>} : vector<16x32xf32>, vector<32x32xf32>, vector<16x32xf32> -> vector<16x32xf32>
      %c0_72 = arith.constant 0 : index
      %c0_73 = arith.constant 0 : index
      %156 = vector.load %arg7[%c0_72, %c0_73] : memref<1x32xf32, #tpu.memory_space<vmem>>, vector<1x32xf32>
      %157 = vector.broadcast %156 : vector<1x32xf32> to vector<16x32xf32>
      %158 = arith.addf %155, %157 : vector<16x32xf32>
      %c0_74 = arith.constant 0 : index
      %c0_75 = arith.constant 0 : index
      %159 = vector.load %arg23[%c0_74, %c0_75] : memref<16x32xf32, #tpu.memory_space<vmem>>, vector<16x32xf32>
      tpu.vector_store %arg23[%c0_74, %c0_75], %153 {strides = array<i32>} : memref<16x32xf32, #tpu.memory_space<vmem>>, vector<16x32xf32>,
      %c0_76 = arith.constant 0 : index
      %c0_77 = arith.constant 0 : index
      %160 = vector.load %arg24[%c0_76, %c0_77] : memref<16x32xf32, #tpu.memory_space<vmem>>, vector<16x32xf32>
      tpu.vector_store %arg24[%c0_76, %c0_77], %158 {strides = array<i32>} : memref<16x32xf32, #tpu.memory_space<vmem>>, vector<16x32xf32>,
    } else {
    }
    %c0 = arith.constant 0 : index
    %c0_1 = arith.constant 0 : index
    %c0_2 = arith.constant 0 : index
    %3 = vector.load %arg4[%c0, %c0_1, %c0_2] : memref<2x8x32xf32, #tpu.memory_space<vmem>>, vector<2x8x32xf32>
    %4 = vector.shape_cast %3 : vector<2x8x32xf32> to vector<16x32xf32>
    %c0_3 = arith.constant 0 : index
    %c0_4 = arith.constant 0 : index
    %5 = vector.load %arg10[%c0_3, %c0_4] : memref<32x32xf32, #tpu.memory_space<vmem>>, vector<32x32xf32>
    %cst = arith.constant dense<0.000000e+00> : vector<16x32xf32>
    %6 = tpu.matmul %4, %5, %cst {dimension_numbers = #tpu.dot_dimension_numbers<[1], [0], [0], [1], [0, 0, 1, 1], [], []>} : vector<16x32xf32>, vector<32x32xf32>, vector<16x32xf32> -> vector<16x32xf32>
    %c0_5 = arith.constant 0 : index
    %c0_6 = arith.constant 0 : index
    %7 = vector.load %arg11[%c0_5, %c0_6] : memref<1x32xf32, #tpu.memory_space<vmem>>, vector<1x32xf32>
    %8 = vector.broadcast %7 : vector<1x32xf32> to vector<16x32xf32>
    %9 = arith.addf %6, %8 : vector<16x32xf32>
    %10 = vector.shape_cast %9 : vector<16x32xf32> to vector<2x8x32xf32>
    %11 = vector.extract_strided_slice %10 {offsets = [0, 0, 0], sizes = [2, 8, 8], strides = [1, 1, 1]} : vector<2x8x32xf32> to vector<2x8x8xf32>
    %12 = vector.extract_strided_slice %10 {offsets = [0, 0, 8], sizes = [2, 8, 8], strides = [1, 1, 1]} : vector<2x8x32xf32> to vector<2x8x8xf32>
    %13 = vector.extract_strided_slice %10 {offsets = [0, 0, 16], sizes = [2, 8, 8], strides = [1, 1, 1]} : vector<2x8x32xf32> to vector<2x8x8xf32>
    %14 = vector.extract_strided_slice %10 {offsets = [0, 0, 24], sizes = [2, 8, 8], strides = [1, 1, 1]} : vector<2x8x32xf32> to vector<2x8x8xf32>
    %15 = vector.shape_cast %11 : vector<2x8x8xf32> to vector<1x2x8x8xf32>
    %16 = vector.shape_cast %12 : vector<2x8x8xf32> to vector<1x2x8x8xf32>
    %17 = vector.shape_cast %13 : vector<2x8x8xf32> to vector<1x2x8x8xf32>
    %18 = vector.shape_cast %14 : vector<2x8x8xf32> to vector<1x2x8x8xf32>
    %19 = tpu.concatenate %15, %16, %17, %18 in 0 : vector<1x2x8x8xf32>, vector<1x2x8x8xf32>, vector<1x2x8x8xf32>, vector<1x2x8x8xf32> -> vector<4x2x8x8xf32>
    %20 = vector.shape_cast %19 : vector<4x2x8x8xf32> to vector<8x8x8xf32>
    %c0_7 = arith.constant 0 : index
    %c0_8 = arith.constant 0 : index
    %21 = vector.load %arg23[%c0_7, %c0_8] : memref<16x32xf32, #tpu.memory_space<vmem>>, vector<16x32xf32>
    %22 = vector.shape_cast %21 : vector<16x32xf32> to vector<2x8x32xf32>
    %23 = vector.extract_strided_slice %22 {offsets = [0, 0, 0], sizes = [2, 8, 8], strides = [1, 1, 1]} : vector<2x8x32xf32> to vector<2x8x8xf32>
    %24 = vector.extract_strided_slice %22 {offsets = [0, 0, 8], sizes = [2, 8, 8], strides = [1, 1, 1]} : vector<2x8x32xf32> to vector<2x8x8xf32>
    %25 = vector.extract_strided_slice %22 {offsets = [0, 0, 16], sizes = [2, 8, 8], strides = [1, 1, 1]} : vector<2x8x32xf32> to vector<2x8x8xf32>
    %26 = vector.extract_strided_slice %22 {offsets = [0, 0, 24], sizes = [2, 8, 8], strides = [1, 1, 1]} : vector<2x8x32xf32> to vector<2x8x8xf32>
    %27 = vector.shape_cast %23 : vector<2x8x8xf32> to vector<1x2x8x8xf32>
    %28 = vector.shape_cast %24 : vector<2x8x8xf32> to vector<1x2x8x8xf32>
    %29 = vector.shape_cast %25 : vector<2x8x8xf32> to vector<1x2x8x8xf32>
    %30 = vector.shape_cast %26 : vector<2x8x8xf32> to vector<1x2x8x8xf32>
    %31 = tpu.concatenate %27, %28, %29, %30 in 0 : vector<1x2x8x8xf32>, vector<1x2x8x8xf32>, vector<1x2x8x8xf32>, vector<1x2x8x8xf32> -> vector<4x2x8x8xf32>
    %32 = vector.shape_cast %31 : vector<4x2x8x8xf32> to vector<8x8x8xf32>
    %c0_9 = arith.constant 0 : index
    %c0_10 = arith.constant 0 : index
    %33 = vector.load %arg24[%c0_9, %c0_10] : memref<16x32xf32, #tpu.memory_space<vmem>>, vector<16x32xf32>
    %34 = vector.shape_cast %33 : vector<16x32xf32> to vector<2x8x32xf32>
    %35 = vector.extract_strided_slice %34 {offsets = [0, 0, 0], sizes = [2, 8, 8], strides = [1, 1, 1]} : vector<2x8x32xf32> to vector<2x8x8xf32>
    %36 = vector.extract_strided_slice %34 {offsets = [0, 0, 8], sizes = [2, 8, 8], strides = [1, 1, 1]} : vector<2x8x32xf32> to vector<2x8x8xf32>
    %37 = vector.extract_strided_slice %34 {offsets = [0, 0, 16], sizes = [2, 8, 8], strides = [1, 1, 1]} : vector<2x8x32xf32> to vector<2x8x8xf32>
    %38 = vector.extract_strided_slice %34 {offsets = [0, 0, 24], sizes = [2, 8, 8], strides = [1, 1, 1]} : vector<2x8x32xf32> to vector<2x8x8xf32>
    %39 = vector.shape_cast %35 : vector<2x8x8xf32> to vector<1x2x8x8xf32>
    %40 = vector.shape_cast %36 : vector<2x8x8xf32> to vector<1x2x8x8xf32>
    %41 = vector.shape_cast %37 : vector<2x8x8xf32> to vector<1x2x8x8xf32>
    %42 = vector.shape_cast %38 : vector<2x8x8xf32> to vector<1x2x8x8xf32>
    %43 = tpu.concatenate %39, %40, %41, %42 in 0 : vector<1x2x8x8xf32>, vector<1x2x8x8xf32>, vector<1x2x8x8xf32>, vector<1x2x8x8xf32> -> vector<4x2x8x8xf32>
    %44 = vector.shape_cast %43 : vector<4x2x8x8xf32> to vector<8x8x8xf32>
    "tpu.trace_start"() <{level = 10 : i32, message = "bqd,bkd->bqk"}> : () -> ()
    %cst_11 = arith.constant dense<0.000000e+00> : vector<8x8x8xf32>
    %45 = tpu.matmul %20, %32, %cst_11 {dimension_numbers = #tpu.dot_dimension_numbers<[2], [2], [1], [1], [0, 0, 0, 1, 1, 1], [0], [0]>} : vector<8x8x8xf32>, vector<8x8x8xf32>, vector<8x8x8xf32> -> vector<8x8x8xf32>
    "tpu.trace_stop"() : () -> ()
    %46 = vector.shape_cast %45 : vector<8x8x8xf32> to vector<4x2x8x8xf32>
    %c0_12 = arith.constant 0 : index
    %c0_13 = arith.constant 0 : index
    %c0_14 = arith.constant 0 : index
    %c0_15 = arith.constant 0 : index
    %47 = vector.load %arg5[%c0_12, %c0_13, %c0_14, %c0_15] : memref<2x1x8x8xi8, #tpu.memory_space<vmem>>, vector<2x1x8x8xi8>
    %48 = vector.shape_cast %47 : vector<2x1x8x8xi8> to vector<2x8x8xi8>
    %49 = arith.extsi %48 : vector<2x8x8xi8> to vector<2x8x8xi32>
    %c0_i32_16 = arith.constant 0 : i32
    %50 = vector.broadcast %c0_i32_16 : i32 to vector<2x8x8xi32>
    %51 = arith.cmpi eq, %49, %50 : vector<2x8x8xi32>
    %52 = vector.shape_cast %51 : vector<2x8x8xi1> to vector<1x2x8x8xi1>
    %cst_17 = arith.constant -1.76776698E+19 : f32
    %53 = vector.shape_cast %52 : vector<1x2x8x8xi1> to vector<1x2x8x8xi1>
    %54 = vector.broadcast %53 : vector<1x2x8x8xi1> to vector<4x2x8x8xi1>
    %55 = vector.broadcast %cst_17 : f32 to vector<4x2x8x8xf32>
    %56 = arith.select %54, %55, %46 : vector<4x2x8x8xi1>, vector<4x2x8x8xf32>
    %cst_18 = arith.constant dense<0xFF800000> : vector<4x2x8xf32>
    %57 = vector.multi_reduction <maximumf>, %56, %cst_18 [3] : vector<4x2x8x8xf32> to vector<4x2x8xf32>
    %58 = vector.shape_cast %57 : vector<4x2x8xf32> to vector<4x2x8x1xf32>
    %59 = vector.broadcast %58 : vector<4x2x8x1xf32> to vector<4x2x8x8xf32>
    %60 = arith.subf %56, %59 : vector<4x2x8x8xf32>
    %61 = math.exp %60 : vector<4x2x8x8xf32>
    %cst_19 = arith.constant dense<0.000000e+00> : vector<4x2x8xf32>
    %62 = vector.multi_reduction <add>, %61, %cst_19 [3] : vector<4x2x8x8xf32> to vector<4x2x8xf32>
    %63 = vector.shape_cast %62 : vector<4x2x8xf32> to vector<4x2x8x1xf32>
    %64 = tpu.reciprocal %63 : vector<4x2x8x1xf32> -> vector<4x2x8x1xf32>
    %65 = vector.broadcast %64 : vector<4x2x8x1xf32> to vector<4x2x8x8xf32>
    %66 = arith.mulf %61, %65 : vector<4x2x8x8xf32>
    %67 = vector.shape_cast %66 : vector<4x2x8x8xf32> to vector<8x8x8xf32>
    "tpu.trace_start"() <{level = 10 : i32, message = "bqk,bkd->bqd"}> : () -> ()
    %cst_20 = arith.constant dense<0.000000e+00> : vector<8x8x8xf32>
    %68 = tpu.matmul %67, %44, %cst_20 {dimension_numbers = #tpu.dot_dimension_numbers<[2], [1], [1], [2], [0, 0, 0, 1, 1, 2], [0], [0]>} : vector<8x8x8xf32>, vector<8x8x8xf32>, vector<8x8x8xf32> -> vector<8x8x8xf32>
    "tpu.trace_stop"() : () -> ()
    %69 = vector.shape_cast %68 : vector<8x8x8xf32> to vector<4x2x8x8xf32>
    %70 = vector.extract_strided_slice %69 {offsets = [0, 0, 0, 0], sizes = [1, 2, 8, 8], strides = [1, 1, 1, 1]} : vector<4x2x8x8xf32> to vector<1x2x8x8xf32>
    %71 = vector.shape_cast %70 : vector<1x2x8x8xf32> to vector<2x8x8xf32>
    %72 = vector.extract_strided_slice %69 {offsets = [1, 0, 0, 0], sizes = [1, 2, 8, 8], strides = [1, 1, 1, 1]} : vector<4x2x8x8xf32> to vector<1x2x8x8xf32>
    %73 = vector.shape_cast %72 : vector<1x2x8x8xf32> to vector<2x8x8xf32>
    %74 = vector.extract_strided_slice %69 {offsets = [2, 0, 0, 0], sizes = [1, 2, 8, 8], strides = [1, 1, 1, 1]} : vector<4x2x8x8xf32> to vector<1x2x8x8xf32>
    %75 = vector.shape_cast %74 : vector<1x2x8x8xf32> to vector<2x8x8xf32>
    %76 = vector.extract_strided_slice %69 {offsets = [3, 0, 0, 0], sizes = [1, 2, 8, 8], strides = [1, 1, 1, 1]} : vector<4x2x8x8xf32> to vector<1x2x8x8xf32>
    %77 = vector.shape_cast %76 : vector<1x2x8x8xf32> to vector<2x8x8xf32>
    %78 = tpu.concatenate %71, %73, %75, %77 in 2 : vector<2x8x8xf32>, vector<2x8x8xf32>, vector<2x8x8xf32>, vector<2x8x8xf32> -> vector<2x8x32xf32>
    %79 = vector.shape_cast %78 : vector<2x8x32xf32> to vector<16x32xf32>
    %c0_21 = arith.constant 0 : index
    %c0_22 = arith.constant 0 : index
    %80 = vector.load %arg12[%c0_21, %c0_22] : memref<32x32xf32, #tpu.memory_space<vmem>>, vector<32x32xf32>
    %cst_23 = arith.constant dense<0.000000e+00> : vector<16x32xf32>
    %81 = tpu.matmul %79, %80, %cst_23 {dimension_numbers = #tpu.dot_dimension_numbers<[1], [0], [0], [1], [0, 0, 1, 1], [], []>} : vector<16x32xf32>, vector<32x32xf32>, vector<16x32xf32> -> vector<16x32xf32>
    %c0_24 = arith.constant 0 : index
    %c0_25 = arith.constant 0 : index
    %82 = vector.load %arg13[%c0_24, %c0_25] : memref<1x32xf32, #tpu.memory_space<vmem>>, vector<1x32xf32>
    %83 = vector.broadcast %82 : vector<1x32xf32> to vector<16x32xf32>
    %84 = arith.addf %81, %83 : vector<16x32xf32>
    %85 = arith.addf %84, %4 : vector<16x32xf32>
    %cst_26 = arith.constant dense<0.000000e+00> : vector<16xf32>
    %86 = vector.multi_reduction <add>, %85, %cst_26 [1] : vector<16x32xf32> to vector<16xf32>
    %87 = vector.shape_cast %86 : vector<16xf32> to vector<16x1xf32>
    %cst_27 = arith.constant 3.200000e+01 : f32
    %88 = vector.broadcast %cst_27 : f32 to vector<16x1xf32>
    %89 = arith.divf %87, %88 : vector<16x1xf32>
    %90 = vector.broadcast %89 : vector<16x1xf32> to vector<16x32xf32>
    %91 = arith.subf %85, %90 : vector<16x32xf32>
    %92 = arith.mulf %91, %91 : vector<16x32xf32>
    %cst_28 = arith.constant dense<0.000000e+00> : vector<16xf32>
    %93 = vector.multi_reduction <add>, %92, %cst_28 [1] : vector<16x32xf32> to vector<16xf32>
    %94 = vector.shape_cast %93 : vector<16xf32> to vector<16x1xf32>
    %cst_29 = arith.constant 3.200000e+01 : f32
    %95 = vector.broadcast %cst_29 : f32 to vector<16x1xf32>
    %96 = arith.divf %94, %95 : vector<16x1xf32>
    %cst_30 = arith.constant 9.99999974E-6 : f32
    %97 = vector.broadcast %cst_30 : f32 to vector<16x1xf32>
    %98 = arith.addf %96, %97 : vector<16x1xf32>
    %99 = math.rsqrt %98 : vector<16x1xf32>
    %100 = vector.broadcast %99 : vector<16x1xf32> to vector<16x32xf32>
    %101 = arith.mulf %91, %100 : vector<16x32xf32>
    %c0_31 = arith.constant 0 : index
    %c0_32 = arith.constant 0 : index
    %102 = vector.load %arg14[%c0_31, %c0_32] : memref<1x32xf32, #tpu.memory_space<vmem>>, vector<1x32xf32>
    %103 = vector.broadcast %102 : vector<1x32xf32> to vector<16x32xf32>
    %104 = arith.mulf %101, %103 : vector<16x32xf32>
    %c0_33 = arith.constant 0 : index
    %c0_34 = arith.constant 0 : index
    %105 = vector.load %arg15[%c0_33, %c0_34] : memref<1x32xf32, #tpu.memory_space<vmem>>, vector<1x32xf32>
    %106 = vector.broadcast %105 : vector<1x32xf32> to vector<16x32xf32>
    %107 = arith.addf %104, %106 : vector<16x32xf32>
    %c0_35 = arith.constant 0 : index
    %c0_36 = arith.constant 0 : index
    %108 = vector.load %arg16[%c0_35, %c0_36] : memref<32x128xf32, #tpu.memory_space<vmem>>, vector<32x128xf32>
    %cst_37 = arith.constant dense<0.000000e+00> : vector<16x128xf32>
    %109 = tpu.matmul %107, %108, %cst_37 {dimension_numbers = #tpu.dot_dimension_numbers<[1], [0], [0], [1], [0, 0, 1, 1], [], []>} : vector<16x32xf32>, vector<32x128xf32>, vector<16x128xf32> -> vector<16x128xf32>
    %c0_38 = arith.constant 0 : index
    %c0_39 = arith.constant 0 : index
    %110 = vector.load %arg17[%c0_38, %c0_39] : memref<1x128xf32, #tpu.memory_space<vmem>>, vector<1x128xf32>
    %111 = vector.broadcast %110 : vector<1x128xf32> to vector<16x128xf32>
    %112 = arith.addf %109, %111 : vector<16x128xf32>
    %cst_40 = arith.constant 0.000000e+00 : f32
    %113 = vector.broadcast %cst_40 : f32 to vector<16x128xf32>
    %114 = arith.maximumf %112, %113 : vector<16x128xf32>
    %c0_41 = arith.constant 0 : index
    %c0_42 = arith.constant 0 : index
    %115 = vector.load %arg18[%c0_41, %c0_42] : memref<128x32xf32, #tpu.memory_space<vmem>>, vector<128x32xf32>
    %cst_43 = arith.constant dense<0.000000e+00> : vector<16x32xf32>
    %116 = tpu.matmul %114, %115, %cst_43 {dimension_numbers = #tpu.dot_dimension_numbers<[1], [0], [0], [1], [0, 0, 1, 1], [], []>} : vector<16x128xf32>, vector<128x32xf32>, vector<16x32xf32> -> vector<16x32xf32>
    %c0_44 = arith.constant 0 : index
    %c0_45 = arith.constant 0 : index
    %117 = vector.load %arg19[%c0_44, %c0_45] : memref<1x32xf32, #tpu.memory_space<vmem>>, vector<1x32xf32>
    %118 = vector.broadcast %117 : vector<1x32xf32> to vector<16x32xf32>
    %119 = arith.addf %116, %118 : vector<16x32xf32>
    %120 = arith.addf %119, %107 : vector<16x32xf32>
    %cst_46 = arith.constant dense<0.000000e+00> : vector<16xf32>
    %121 = vector.multi_reduction <add>, %120, %cst_46 [1] : vector<16x32xf32> to vector<16xf32>
    %122 = vector.shape_cast %121 : vector<16xf32> to vector<16x1xf32>
    %cst_47 = arith.constant 3.200000e+01 : f32
    %123 = vector.broadcast %cst_47 : f32 to vector<16x1xf32>
    %124 = arith.divf %122, %123 : vector<16x1xf32>
    %125 = vector.broadcast %124 : vector<16x1xf32> to vector<16x32xf32>
    %126 = arith.subf %120, %125 : vector<16x32xf32>
    %127 = arith.mulf %126, %126 : vector<16x32xf32>
    %cst_48 = arith.constant dense<0.000000e+00> : vector<16xf32>
    %128 = vector.multi_reduction <add>, %127, %cst_48 [1] : vector<16x32xf32> to vector<16xf32>
    %129 = vector.shape_cast %128 : vector<16xf32> to vector<16x1xf32>
    %cst_49 = arith.constant 3.200000e+01 : f32
    %130 = vector.broadcast %cst_49 : f32 to vector<16x1xf32>
    %131 = arith.divf %129, %130 : vector<16x1xf32>
    %cst_50 = arith.constant 9.99999974E-6 : f32
    %132 = vector.broadcast %cst_50 : f32 to vector<16x1xf32>
    %133 = arith.addf %131, %132 : vector<16x1xf32>
    %134 = math.rsqrt %133 : vector<16x1xf32>
    %135 = vector.broadcast %134 : vector<16x1xf32> to vector<16x32xf32>
    %136 = arith.mulf %126, %135 : vector<16x32xf32>
    %c0_51 = arith.constant 0 : index
    %c0_52 = arith.constant 0 : index
    %137 = vector.load %arg20[%c0_51, %c0_52] : memref<1x32xf32, #tpu.memory_space<vmem>>, vector<1x32xf32>
    %138 = vector.broadcast %137 : vector<1x32xf32> to vector<16x32xf32>
    %139 = arith.mulf %136, %138 : vector<16x32xf32>
    %c0_53 = arith.constant 0 : index
    %c0_54 = arith.constant 0 : index
    %140 = vector.load %arg21[%c0_53, %c0_54] : memref<1x32xf32, #tpu.memory_space<vmem>>, vector<1x32xf32>
    %141 = vector.broadcast %140 : vector<1x32xf32> to vector<16x32xf32>
    %142 = arith.addf %139, %141 : vector<16x32xf32>
    %143 = vector.shape_cast %142 : vector<16x32xf32> to vector<2x8x32xf32>
    %c0_55 = arith.constant 0 : index
    %c0_56 = arith.constant 0 : index
    %c0_57 = arith.constant 0 : index
    %144 = vector.load %arg22[%c0_55, %c0_56, %c0_57] : memref<2x8x32xf32, #tpu.memory_space<vmem>>, vector<2x8x32xf32>
    tpu.vector_store %arg22[%c0_55, %c0_56, %c0_57], %143 {strides = array<i32>} : memref<2x8x32xf32, #tpu.memory_space<vmem>>, vector<2x8x32xf32>,
    return
  }
  func.func @transform_0(%arg0: i32, %arg1: i32) -> (i32, i32, i32) {
    %c0_i32 = arith.constant 0 : i32
    %c0_i32_0 = arith.constant 0 : i32
    %c0_i32_1 = arith.constant 0 : i32
    return %arg0, %c0_i32, %c0_i32_0 : i32, i32, i32
  }
  func.func @transform_1(%arg0: i32, %arg1: i32) -> (i32, i32, i32) {
    %c0_i32 = arith.constant 0 : i32
    %c0_i32_0 = arith.constant 0 : i32
    %c0_i32_1 = arith.constant 0 : i32
    return %arg0, %c0_i32, %c0_i32_0 : i32, i32, i32
  }
  func.func @transform_2(%arg0: i32, %arg1: i32) -> (i32, i32, i32) {
    %c0_i32 = arith.constant 0 : i32
    %c0_i32_0 = arith.constant 0 : i32
    return %arg0, %arg1, %c0_i32 : i32, i32, i32
  }
  func.func @transform_3(%arg0: i32, %arg1: i32) -> (i32, i32, i32, i32) {
    %c0_i32 = arith.constant 0 : i32
    %c0_i32_0 = arith.constant 0 : i32
    %c0_i32_1 = arith.constant 0 : i32
    return %arg0, %c0_i32, %arg1, %c0_i32_0 : i32, i32, i32, i32
  }
  func.func @transform_4(%arg0: i32, %arg1: i32) -> (i32, i32) {
    %c0_i32 = arith.constant 0 : i32
    %c0_i32_0 = arith.constant 0 : i32
    %c0_i32_1 = arith.constant 0 : i32
    return %c0_i32, %c0_i32_0 : i32, i32
  }
  func.func @transform_5(%arg0: i32, %arg1: i32) -> (i32, i32) {
    %c0_i32 = arith.constant 0 : i32
    %c0_i32_0 = arith.constant 0 : i32
    %c0_i32_1 = arith.constant 0 : i32
    return %c0_i32, %c0_i32_0 : i32, i32
  }
  func.func @transform_6(%arg0: i32, %arg1: i32) -> (i32, i32) {
    %c0_i32 = arith.constant 0 : i32
    %c0_i32_0 = arith.constant 0 : i32
    %c0_i32_1 = arith.constant 0 : i32
    return %c0_i32, %c0_i32_0 : i32, i32
  }
  func.func @transform_7(%arg0: i32, %arg1: i32) -> (i32, i32) {
    %c0_i32 = arith.constant 0 : i32
    %c0_i32_0 = arith.constant 0 : i32
    %c0_i32_1 = arith.constant 0 : i32
    return %c0_i32, %c0_i32_0 : i32, i32
  }
  func.func @transform_8(%arg0: i32, %arg1: i32) -> (i32, i32) {
    %c0_i32 = arith.constant 0 : i32
    %c0_i32_0 = arith.constant 0 : i32
    %c0_i32_1 = arith.constant 0 : i32
    return %c0_i32, %c0_i32_0 : i32, i32
  }
  func.func @transform_9(%arg0: i32, %arg1: i32) -> (i32, i32) {
    %c0_i32 = arith.constant 0 : i32
    %c0_i32_0 = arith.constant 0 : i32
    %c0_i32_1 = arith.constant 0 : i32
    return %c0_i32, %c0_i32_0 : i32, i32
  }
  func.func @transform_10(%arg0: i32, %arg1: i32) -> (i32, i32) {
    %c0_i32 = arith.constant 0 : i32
    %c0_i32_0 = arith.constant 0 : i32
    %c0_i32_1 = arith.constant 0 : i32
    return %c0_i32, %c0_i32_0 : i32, i32
  }
  func.func @transform_11(%arg0: i32, %arg1: i32) -> (i32, i32) {
    %c0_i32 = arith.constant 0 : i32
    %c0_i32_0 = arith.constant 0 : i32
    %c0_i32_1 = arith.constant 0 : i32
    return %c0_i32, %c0_i32_0 : i32, i32
  }
  func.func @transform_12(%arg0: i32, %arg1: i32) -> (i32, i32) {
    %c0_i32 = arith.constant 0 : i32
    %c0_i32_0 = arith.constant 0 : i32
    %c0_i32_1 = arith.constant 0 : i32
    return %c0_i32, %c0_i32_0 : i32, i32
  }
  func.func @transform_13(%arg0: i32, %arg1: i32) -> (i32, i32) {
    %c0_i32 = arith.constant 0 : i32
    %c0_i32_0 = arith.constant 0 : i32
    %c0_i32_1 = arith.constant 0 : i32
    return %c0_i32, %c0_i32_0 : i32, i32
  }
  func.func @transform_14(%arg0: i32, %arg1: i32) -> (i32, i32) {
    %c0_i32 = arith.constant 0 : i32
    %c0_i32_0 = arith.constant 0 : i32
    %c0_i32_1 = arith.constant 0 : i32
    return %c0_i32, %c0_i32_0 : i32, i32
  }
  func.func @transform_15(%arg0: i32, %arg1: i32) -> (i32, i32) {
    %c0_i32 = arith.constant 0 : i32
    %c0_i32_0 = arith.constant 0 : i32
    %c0_i32_1 = arith.constant 0 : i32
    return %c0_i32, %c0_i32_0 : i32, i32
  }
  func.func @transform_16(%arg0: i32, %arg1: i32) -> (i32, i32) {
    %c0_i32 = arith.constant 0 : i32
    %c0_i32_0 = arith.constant 0 : i32
    %c0_i32_1 = arith.constant 0 : i32
    return %c0_i32, %c0_i32_0 : i32, i32
  }
  func.func @transform_17(%arg0: i32, %arg1: i32) -> (i32, i32) {
    %c0_i32 = arith.constant 0 : i32
    %c0_i32_0 = arith.constant 0 : i32
    %c0_i32_1 = arith.constant 0 : i32
    return %c0_i32, %c0_i32_0 : i32, i32
  }
  func.func @transform_18(%arg0: i32, %arg1: i32) -> (i32, i32) {
    %c0_i32 = arith.constant 0 : i32
    %c0_i32_0 = arith.constant 0 : i32
    %c0_i32_1 = arith.constant 0 : i32
    return %c0_i32, %c0_i32_0 : i32, i32
  }
  func.func @transform_19(%arg0: i32, %arg1: i32) -> (i32, i32) {
    %c0_i32 = arith.constant 0 : i32
    %c0_i32_0 = arith.constant 0 : i32
    %c0_i32_1 = arith.constant 0 : i32
    return %c0_i32, %c0_i32_0 : i32, i32
  }
  func.func @transform_20(%arg0: i32, %arg1: i32) -> (i32, i32, i32) {
    %c0_i32 = arith.constant 0 : i32
    %c0_i32_0 = arith.constant 0 : i32
    return %arg0, %arg1, %c0_i32 : i32, i32, i32
  }
}

</mosaic_0001>

<bundles_post_ra>
// kernel: tpu_custom_call.1
= control target key start
LH: loop header
LB: loop body
LE: loop exit
PB: predicated region body
PF: predicated region fallthrough
CT: control target
= control target key end

     0   :  { %s3193_s0 = inlined_call_operand.hbm [shape: f32[2,8,32], index: 0, kind: input, shape index: {}]   ;;  %s3194_s1 = inlined_call_operand.hbm [shape: f32[2,8,32], index: 1, kind: input, shape index: {}]   ;;  %s3195_s2 = inlined_call_operand.hbm [shape: f32[2,8,32], index: 2, kind: input, shape index: {}]   ;;  %s3196_s3 = inlined_call_operand.vmem [shape: s8[2,1,8,8], index: 3, kind: input, shape index: {}]   ;;  %s3197_s4 = inlined_call_operand.vmem [shape: f32[32,32], index: 4, kind: input, shape index: {}]   ;;  %s3198_s5 = inlined_call_operand.vmem [shape: f32[1,32], index: 5, kind: input, shape index: {}]   ;;  %s3199_s6 = inlined_call_operand.vmem [shape: f32[32,32], index: 6, kind: input, shape index: {}]   ;;  %s3200_s7 = inlined_call_operand.vmem [shape: f32[1,32], index: 7, kind: input, shape index: {}]   ;;  %s3201_s8 = inlined_call_operand.vmem [shape: f32[32,32], index: 8, kind: input, shape index: {}]   ;;  %s3202_s9 = inlined_call_operand.vmem [shape: f32[1,32], index: 9, kind: input, shape index: {}]   ;;  %s3203_s10 = inlined_call_operand.vmem [shape: f32[32,32], index: 10, kind: input, shape index: {}]   ;;  %s3204_s11 = inlined_call_operand.vmem [shape: f32[1,32], index: 11, kind: input, shape index: {}]   ;;  %s3205_s12 = inlined_call_operand.vmem [shape: f32[1,32], index: 12, kind: input, shape index: {}]   ;;  %s3206_s13 = inlined_call_operand.vmem [shape: f32[1,32], index: 13, kind: input, shape index: {}]   ;;  %s3207_s14 = inlined_call_operand.vmem [shape: f32[32,128], index: 14, kind: input, shape index: {}]   ;;  %s3208_s15 = inlined_call_operand.vmem [shape: f32[1,128], index: 15, kind: input, shape index: {}]   ;;  %s3209_s16 = inlined_call_operand.vmem [shape: f32[128,32], index: 16, kind: input, shape index: {}]   ;;  %s3210_s17 = inlined_call_operand.vmem [shape: f32[1,32], index: 17, kind: input, shape index: {}]   ;;  %s3211_s18 = inlined_call_operand.vmem [shape: f32[1,32], index: 18, kind: input, shape index: {}]   ;;  %s3212_s19 = inlined_call_operand.vmem [shape: f32[1,32], index: 19, kind: input, shape index: {}]   ;;  %s3213_s20 = inlined_call_operand.hbm [shape: f32[2,8,32], index: 20, kind: output, shape index: {}]  }
   0x1   :  { %3219 = sst [smem:[#allocation14_spill]] %s3193_s0 }
   0x2   :  { %3220 = sst [smem:[#allocation15_spill]] %s3194_s1 }
   0x3   :  { %3221 = sst [smem:[#allocation16_spill]] %s3195_s2 }
   0x4   :  { %3222 = sst [smem:[#allocation17_spill]] %s3196_s3 }
   0x5   :  { %3223 = sst [smem:[#allocation18_spill]] %s3197_s4 }
   0x6   :  { %3224 = sst [smem:[#allocation19_spill]] %s3212_s19 }
   0x7   :  { %3225 = sst [smem:[#allocation20_spill]] %s3213_s20 }
   0x8   :  { %25 = vsyncpa [#allocation5], 0 }
   0x9   :  { %26 = vsyncpa [#allocation8], 0 }
   0xa   :  { %27 = vsyncpa [#allocation6], 0  ;;  %s2680_s1 = smov [#allocation7]   ;;  %s2681_s23 = smov [#allocation4]  }
   0xb   :  { %s45_s22 = sshll.u32 %s2680_s1, 4  ;;  %s33_s24 = sshll.u32 %s2681_s23, 4  ;;  %s46_s22 = int_to_ptr.vmem [resolvable:$true] %s45_s22  ;;  %s2798_s24 = int_to_ptr.vmem [resolvable:$true] %s33_s24 }
   0xc   :  { %s3226_s3 = sld [smem:[#allocation15_spill]] }
  0x12   :  { %s2586_s26 = scalar_lea.hbm %s3226_s3, 256 }
  0x13   :  { %p2587_p0 = scmp.ne.s32.totalorder %s3226_s3, %s2586_s26  ;;  %p2590_p1 = scmp.lt.u32.totalorder %s2586_s26, %s3226_s3 }
  0x15   :  { %p2592_p2 = pnand %p2590_p1, %p2587_p0 }
  0x17   :  { %2595 = shalt.err (!%p2592_p2)
}
  0x18   :  { %s2596_s30 = scalar_lea.vmem %s46_s22, 256  ;;  %p2601_p4 = scmp.lt.s32.totalorder %s46_s22, %s46_s22 }
  0x19   :  { %p2597_p3 = scmp.ne.s32.totalorder %s46_s22, %s2596_s30  ;;  %p2602_p5 = scmp.lt.s32.totalorder %s2596_s30, %s2596_s30 }
  0x1b   :  { %p2603_p6 = por %p2602_p5, %p2601_p4 }
  0x1d   :  { %p2604_p7 = pnand %p2603_p6, %p2597_p3 }
  0x1f   :  { %2607 = shalt.err (!%p2604_p7)
}
  0x20   :  { %s2682_s0 = smov 128   ;;  %s2683_s21 = smov 8  }
  0x21   :  { %51 = dma.hbm_to_vmem [thread:$0]  %s3226_s3, 256, %s46_s22, [#allocation8], %s2682_s0, %s2682_s0, %s2683_s21  }
  0x22   :  { %s3227_s26 = sld [smem:[#allocation14_spill]] }
  0x28   :  { %s2608_s27 = scalar_lea.hbm %s3227_s26, 256 }
  0x29   :  { %p2609_p8 = scmp.ne.s32.totalorder %s3227_s26, %s2608_s27  ;;  %p2612_p9 = scmp.lt.u32.totalorder %s2608_s27, %s3227_s26 }
  0x2b   :  { %p2614_p10 = pnand %p2612_p9, %p2609_p8 }
  0x2d   :  { %2617 = shalt.err (!%p2614_p10)
}
  0x2e   :  { %s2618_s20 = scalar_lea.vmem %s2798_s24, 256  ;;  %p2623_p12 = scmp.lt.s32.totalorder %s2798_s24, %s2798_s24 }
  0x2f   :  { %p2619_p11 = scmp.ne.s32.totalorder %s2798_s24, %s2618_s20  ;;  %p2624_p13 = scmp.lt.s32.totalorder %s2618_s20, %s2618_s20 }
  0x31   :  { %p2625_p0 = por %p2624_p13, %p2623_p12 }
  0x33   :  { %p2626_p1 = pnand %p2625_p0, %p2619_p11 }
  0x35   :  { %2629 = shalt.err (!%p2626_p1)
}
  0x36   :  { %39 = dma.hbm_to_vmem [thread:$0]  %s3227_s26, 256, %s2798_s24, [#allocation5], %s2682_s0, %s2682_s0, %s2683_s21  }
  0x37   :  { %s2684_s1 = smov [#allocation9]   ;;  %s3228_s27 = sld [smem:[#allocation16_spill]] }
  0x38   :  { %s57_s23 = sshll.u32 %s2684_s1, 4  ;;  %s58_s23 = int_to_ptr.vmem [resolvable:$true] %s57_s23 }
  0x3d   :  { %s2630_s28 = scalar_lea.hbm %s3228_s27, 256 }
  0x3e   :  { %p2631_p2 = scmp.ne.s32.totalorder %s3228_s27, %s2630_s28  ;;  %p2634_p3 = scmp.lt.u32.totalorder %s2630_s28, %s3228_s27 }
  0x40   :  { %p2636_p4 = pnand %p2634_p3, %p2631_p2 }
  0x42   :  { %2639 = shalt.err (!%p2636_p4)
}
  0x43   :  { %s2640_s19 = scalar_lea.vmem %s58_s23, 256  ;;  %p2645_p6 = scmp.lt.s32.totalorder %s58_s23, %s58_s23 }
  0x44   :  { %p2641_p5 = scmp.ne.s32.totalorder %s58_s23, %s2640_s19  ;;  %p2646_p7 = scmp.lt.s32.totalorder %s2640_s19, %s2640_s19 }
  0x46   :  { %p2647_p8 = por %p2646_p7, %p2645_p6 }
  0x48   :  { %p2648_p9 = pnand %p2647_p8, %p2641_p5 }
  0x4a   :  { %2651 = shalt.err (!%p2648_p9)
}
  0x4b   :  { %63 = dma.hbm_to_vmem [thread:$0]  %s3228_s27, 256, %s58_s23, [#allocation8], %s2682_s0, %s2682_s0, %s2683_s21  }
  0x4c   :  { %2674 = dma.done.wait [#allocation5], 256  }
  0x4d   :  { %2675 = vsyncadd [#allocation5], 4294967040 }
  0x4e   :  { %2676 = dma.done.wait [#allocation8], 512  }
  0x4f   :  { %2677 = vsyncadd [#allocation8], 4294966784  ;;  %vm126_vm0 = vcmask 261120   ;;  %v115_v0 = vld [vmem:[%s3199_s6] sm:$0xff]  ;;  %v116_v1 = vld [vmem:[%s3199_s6 + $0x8] sm:$0xff]  ;;  %s3229_s20 = sld [smem:[#allocation18_spill]] }
  0x50   :  { %v117_v2 = vld [vmem:[%s3199_s6 + $0x10] sm:$0xff]  ;;  %v2461_v3 = vpack.c.bf16 %v116_v1, %v115_v0  ;;  %v118_v4 = vld [vmem:[%s3199_s6 + $0x18] sm:$0xff]  ;;  %v113_v14 = vld [vmem:[#allocation4] sm:$0xff]  ;;  %v2685_v24 = vmov 0.0   ;;  %vm2686_vm1 = vmmov 0   ;;  %vm451_vm2 = vcmask 64512  }
  0x51   :  { %v111_v5 = vld [vmem:[#allocation7] sm:$0xff]  ;;  %v2465_v6 = vpack.c.bf16 %v118_v4, %v117_v2  ;;  %v112_v12 = vld [vmem:[#allocation7 + $0x8] sm:$0xff]  ;;  %v306_v15 = vld [vmem:[%s3201_s8] sm:$0xff]  ;;  %2334 = vmatprep.subr.mxu0 %v2685_v24  ;;  %2336 = vmatprep.mubr.msk.f32.mxu0 %vm2686_vm1, %v2685_v24  ;;  %s2688_s30 = smov 112   ;;  %s3230_s22 = sld [smem:[#allocation17_spill]]  ;;  %vm1760_vm5 = vcmask 130048  }
  0x52   :  { %2299 = vmatprep.mubr.msk.f32.mxu1 %vm126_vm0, %v111_v5  ;;  %2462 = vmatprep.subr.bf16.mxu1 %v2461_v3  ;;  %v307_v16 = vld [vmem:[%s3201_s8 + $0x8] sm:$0xff]  ;;  %v308_v18 = vld [vmem:[%s3201_s8 + $0x10] sm:$0xff]  ;;  %v309_v19 = vld [vmem:[%s3201_s8 + $0x18] sm:$0xff]  ;;  %s2690_s8 = smov 16   ;;  %s2691_s4 = smov 24   ;;  %vm1763_vm6 = vcmask 195584  }
  0x53   :  { %2464 = vmatpush3.bf16.msra.mxu1 %v2461_v3  ;;  %v2477_v17 = vpack.c.bf16 %v307_v16, %v306_v15  ;;  %v114_v20 = vld [vmem:[#allocation4 + $0x8] sm:$0xff]  ;;  %v2481_v21 = vpack.c.bf16 %v309_v19, %v308_v18  ;;  %v2889_v22 = vld [vmem:[#allocation9] sm:$0xff]  ;;  %s3235_s29 = sld [smem:[#allocation19_spill]] }
  0x54   :  { %2466 = vmatprep.subr.bf16.mxu1 %v2465_v6  ;;  %v2894_v23 = vld [vmem:[#allocation9 + $0x8] sm:$0xff]  ;;  %v2163_v25 = vld [vmem:[%s3200_s7] ss:$0 sm:$0xff]  ;;  %s2687_s7 = smov 120  }
  0x55   :  { %v208_v7 = vld [vmem:[%s3229_s20] sm:$0xff]  ;;  %v209_v8 = vld [vmem:[%s3229_s20 + $0x8] sm:$0xff]  ;;  %v210_v10 = vld [vmem:[%s3229_s20 + $0x10] sm:$0xff] }
  0x56   :  { %v2469_v9 = vpack.c.bf16 %v209_v8, %v208_v7  ;;  %v211_v11 = vld [vmem:[%s3229_s20 + $0x18] sm:$0xff]  ;;  %v2166_v30 = vld [vmem:[%s3198_s5] ss:$0 sm:$0xff] }
  0x57   :  { %2468 = vmatpush3.bf16.msra.mxu1 %v2465_v6  ;;  %v2473_v13 = vpack.c.bf16 %v211_v11, %v210_v10  ;;  %v2169_v37 = vld [vmem:[%s3202_s9] ss:$0 sm:$0xff]  ;;  %s2689_s9 = smov 104  }
  0x58   :  { %2470 = vmatprep.subr.bf16.mxu1 %v2469_v9  ;;  %v2208_v56 = vld [vmem:[%s3230_s22] sm:$0xf]  }
  0x59   :  { %v2209_v57 = vunpack.c.0.s8 %v2208_v56  ;;  %v2210_v59 = vunpack.c.1.s8 %v2208_v56 }
  0x5a   :  { %2300 = vmatmul.mubr.msk.f32.vlgmr.msra.gmra.mrb[0].mxu1 %vm126_vm0, %v112_v12 }
  0x5b   :  { %2472 = vmatpush3.bf16.msra.mxu1 %v2469_v9  ;;  %2310 = vmatprep.mubr.msk.f32.mxu1 %vm126_vm0, %v113_v14  ;;  %vm2980_vm3 = vcmp.eq.s32.totalorder %v2209_v57, 0  ;;  %vm2987_vm4 = vcmp.eq.s32.totalorder %v2210_v59, 0 }
  0x5c   :  { %2474 = vmatprep.subr.bf16.mxu1 %v2473_v13 }
  0x5f   :  { %2476 = vmatpush3.bf16.msra.mxu1 %v2473_v13 }
  0x60   :  { %2478 = vmatprep.subr.bf16.mxu1 %v2477_v17 }
  0x62   :  { %2311 = vmatmul.mubr.msk.f32.vlgmr.msra.gmra.mrb[2].mxu1 %vm126_vm0, %v114_v20 }
  0x63   :  { %2480 = vmatpush3.bf16.msra.mxu1 %v2477_v17  ;;  %2321 = vmatprep.mubr.msk.f32.mxu1 %vm126_vm0, %v2889_v22 }
  0x64   :  { %2482 = vmatprep.subr.bf16.mxu1 %v2481_v21 }
  0x67   :  { %2484 = vmatpush3.bf16.msra.mxu1 %v2481_v21 }
  0x68   :  { %2324 = vmatprep.subr.mxu1 %v2685_v24 }
  0x6a   :  { %2322 = vmatmul.mubr.msk.f32.vlgmr.msra.gmra.mrb[4].mxu1 %vm126_vm0, %v2894_v23 }
  0x6b   :  { %2326 = vmatprep.mubr.msk.f32.mxu1 %vm2686_vm1, %v2685_v24 }
 0x12d   :  { %v2301_v26 = vpop.f32.mrb[0].mxu1 }
 0x12e   :  { %v205_v27 = vadd.f32 %v2301_v26, %v2163_v25  ;;  %v199_v28 = vpop.f32.mrb[1].mxu1 }
 0x12f   :  { %v200_v29 = vadd.f32 %v2163_v25, %v199_v28 }
 0x130   :  { %301 = vst.msk [vmem:[#allocation2 + $0x8] sm:$0xff] %vm126_vm0, %v205_v27 }
 0x131   :  { %300 = vst.msk [vmem:[#allocation2] sm:$0xff] %vm126_vm0, %v200_v29 }
 0x135   :  { %v2312_v31 = vpop.f32.mrb[2].mxu1 }
 0x136   :  { %v297_v32 = vadd.f32 %v2312_v31, %v2166_v30  ;;  %v291_v33 = vpop.f32.mrb[3].mxu1 }
 0x137   :  { %v292_v34 = vadd.f32 %v2166_v30, %v291_v33  ;;  %v414_v35 = vld [vmem:[#allocation2 + $0x8] sm:$0xff] }
 0x138   :  { %303 = vst.msk [vmem:[#allocation3 + $0x8] sm:$0xff] %vm126_vm0, %v297_v32  ;;  %419 = vrot.lane.b32.xlu0 %v414_v35, %s2687_s7  ;;  %423 = vrot.lane.b32.xlu1 %v414_v35, %s2688_s30  ;;  %v413_v36 = vld [vmem:[#allocation2] sm:$0xff] }
 0x139   :  { %302 = vst.msk [vmem:[#allocation3] sm:$0xff] %vm126_vm0, %v292_v34  ;;  %2325 = vmatpush3.xpose.msk.msra.mxu1 %vm451_vm2, %v413_v36 }
 0x13a   :  { %2329 = vmatprep.subr.mxu1 %v2685_v24 }
 0x13c   :  { %417 = vrot.lane.b32.xlu0 %v413_v36, %s2687_s7 }
 0x13d   :  { %v2323_v38 = vpop.f32.mrb[4].mxu1 }
 0x13e   :  { %v396_v39 = vadd.f32 %v2323_v38, %v2169_v37  ;;  %v390_v40 = vpop.f32.mrb[5].mxu1 }
 0x13f   :  { %v391_v41 = vadd.f32 %v2169_v37, %v390_v40  ;;  %v2971_v55 = vld [vmem:[#allocation3 + $0x8] sm:$0xff] }
 0x140   :  { %403 = vrot.lane.b32.xlu1 %v396_v39, %s2687_s7  ;;  %421 = vrot.lane.b32.xlu0 %v413_v36, %s2688_s30  ;;  %v2963_v53 = vld [vmem:[#allocation3] sm:$0xff] }
 0x141   :  { %2327 = vmatmul.mubr.msk.f32.vlgmr.msra.gmra.mrb[6].mxu1 %vm451_vm2, %v391_v41 }
 0x142   :  { %2330 = vmatpush3.xpose.msk.msra.mxu1 %vm451_vm2, %v414_v35  ;;  %2331 = vmatprep.mubr.msk.f32.mxu1 %vm2686_vm1, %v2685_v24 }
 0x143   :  { %2339 = vmatprep.subr.mxu1 %v2685_v24 }
 0x144   :  { %401 = vrot.lane.b32.xlu1 %v391_v41, %s2687_s7  ;;  %425 = vrot.lane.b32.xlu0 %v413_v36, %s2689_s9 }
 0x145   :  { %2332 = vmatmul.mubr.msk.f32.vlgmr.msra.gmra.mrb[8].mxu1 %vm451_vm2, %v396_v39 }
 0x146   :  { %2341 = vmatprep.mubr.msk.f32.mxu1 %vm2686_vm1, %v2685_v24 }
 0x148   :  { %407 = vrot.lane.b32.xlu1 %v396_v39, %s2688_s30  ;;  %405 = vrot.lane.b32.xlu0 %v391_v41, %s2688_s30 }
 0x14c   :  { %427 = vrot.lane.b32.xlu1 %v414_v35, %s2689_s9  ;;  %409 = vrot.lane.b32.xlu0 %v391_v41, %s2689_s9 }
 0x150   :  { %411 = vrot.lane.b32.xlu1 %v396_v39, %s2689_s9 }
 0x1aa   :  { %v420_v42 = vpop.permute.xlu0 %419  ;;  %v424_v43 = vpop.permute.xlu1 %423 }
 0x1ab   :  { %2340 = vmatpush3.xpose.msk.msra.mxu1 %vm451_vm2, %v420_v42 }
 0x1ac   :  { %2349 = vmatprep.subr.mxu1 %v2685_v24 }
 0x1ae   :  { %v418_v44 = vpop.permute.xlu0 %417 }
 0x1af   :  { %2335 = vmatpush3.xpose.msk.msra.mxu0 %vm451_vm2, %v418_v44 }
 0x1b0   :  { %2344 = vmatprep.subr.mxu0 %v2685_v24 }
 0x1b2   :  { %v404_v45 = vpop.permute.xlu1 %403  ;;  %v422_v46 = vpop.permute.xlu0 %421 }
 0x1b3   :  { %2342 = vmatmul.mubr.msk.f32.vlgmr.msra.gmra.mrb[10].mxu1 %vm451_vm2, %v404_v45 }
 0x1b4   :  { %2350 = vmatpush3.xpose.msk.msra.mxu1 %vm451_vm2, %v424_v43  ;;  %2351 = vmatprep.mubr.msk.f32.mxu1 %vm2686_vm1, %v2685_v24 }
 0x1b5   :  { %2359 = vmatprep.subr.mxu1 %v2685_v24 }
 0x1b6   :  { %v402_v47 = vpop.permute.xlu1 %401  ;;  %v426_v48 = vpop.permute.xlu0 %425 }
 0x1b7   :  { %2337 = vmatmul.mubr.msk.f32.vlgmr.msra.gmra.mrb[0].mxu0 %vm451_vm2, %v402_v47 }
 0x1b8   :  { %2345 = vmatpush3.xpose.msk.msra.mxu0 %vm451_vm2, %v422_v46  ;;  %2346 = vmatprep.mubr.msk.f32.mxu0 %vm2686_vm1, %v2685_v24 }
 0x1b9   :  { %2354 = vmatprep.subr.mxu0 %v2685_v24 }
 0x1ba   :  { %v408_v49 = vpop.permute.xlu1 %407  ;;  %v406_v50 = vpop.permute.xlu0 %405 }
 0x1bb   :  { %2347 = vmatmul.mubr.msk.f32.vlgmr.msra.gmra.mrb[2].mxu0 %vm451_vm2, %v406_v50  ;;  %2352 = vmatmul.mubr.msk.f32.vlgmr.msra.gmra.mrb[12].mxu1 %vm451_vm2, %v408_v49 }
 0x1bc   :  { %2355 = vmatpush3.xpose.msk.msra.mxu0 %vm451_vm2, %v426_v48  ;;  %2356 = vmatprep.mubr.msk.f32.mxu0 %vm2686_vm1, %v2685_v24 }
 0x1bd   :  { %2364 = vmatprep.subr.mxu0 %v2685_v24  ;;  %2361 = vmatprep.mubr.msk.f32.mxu1 %vm2686_vm1, %v2685_v24 }
 0x1be   :  { %v428_v51 = vpop.permute.xlu1 %427  ;;  %v410_v52 = vpop.permute.xlu0 %409 }
 0x1bf   :  { %2357 = vmatmul.mubr.msk.f32.vlgmr.msra.gmra.mrb[4].mxu0 %vm451_vm2, %v410_v52  ;;  %2360 = vmatpush3.xpose.msk.msra.mxu1 %vm451_vm2, %v428_v51 }
 0x1c0   :  { %2365 = vmatpush3.msra.mxu0 %v2963_v53  ;;  %2369 = vmatprep.subr.mxu1 %v2685_v24 }
 0x1c1   :  { %2366 = vmatprep.mubr.msk.f32.mxu0 %vm2686_vm1, %v2685_v24  ;;  %2374 = vmatprep.subr.mxu0 %v2685_v24 }
 0x1c2   :  { %v412_v54 = vpop.permute.xlu1 %411 }
 0x1c3   :  { %2362 = vmatmul.mubr.msk.f32.vlgmr.msra.gmra.mrb[14].mxu1 %vm451_vm2, %v412_v54 }
 0x1c4   :  { %2370 = vmatpush3.msra.mxu1 %v2971_v55  ;;  %2371 = vmatprep.mubr.msk.f32.mxu1 %vm2686_vm1, %v2685_v24 }
 0x1c5   :  { %2379 = vmatprep.subr.mxu1 %v2685_v24 }
 0x214   :  { %v522_v60 = vpop.f32.mrb[6].mxu1 }
 0x215   :  { %v1054_v61 = vsel %vm2980_vm3, -1.767767e+19, %v522_v60  ;;  %v2328_v62 = vpop.f32.mrb[7].mxu1 }
 0x216   :  { %v1062_v63 = vsel %vm451_vm2, %v1054_v61, -inf }
 0x217   :  { %1063 = vmax.xlane.f32.xlu0 %v1062_v63 }
 0x218   :  { %v596_v1 = vpop.f32.mrb[8].mxu1 }
 0x219   :  { %v1055_v2 = vsel %vm2987_vm4, -1.767767e+19, %v596_v1  ;;  %v2333_v3 = vpop.f32.mrb[9].mxu1 }
 0x21a   :  { %v1065_v4 = vsel %vm451_vm2, %v1055_v2, -inf }
 0x21b   :  { %1066 = vmax.xlane.f32.xlu1 %v1065_v4 }
 0x286   :  { %v744_v5 = vpop.f32.mrb[10].mxu1 }
 0x287   :  { %v2343_v6 = vpop.f32.mrb[11].mxu1  ;;  %v1057_v11 = vsel %vm2987_vm4, -1.767767e+19, %v744_v5 }
 0x288   :  { %v1071_v18 = vsel %vm451_vm2, %v1057_v11, -inf }
 0x28a   :  { %v670_v7 = vpop.f32.mrb[0].mxu0 }
 0x28b   :  { %v1056_v8 = vsel %vm2980_vm3, -1.767767e+19, %v670_v7  ;;  %v2338_v9 = vpop.f32.mrb[1].mxu0 }
 0x28c   :  { %v1068_v10 = vsel %vm451_vm2, %v1056_v8, -inf }
 0x28d   :  { %1069 = vmax.xlane.f32.xlu0 %v1068_v10 }
 0x28e   :  { %v818_v12 = vpop.f32.mrb[2].mxu0  ;;  %v892_v13 = vpop.f32.mrb[12].mxu1 }
 0x28f   :  { %v1058_v14 = vsel %vm2980_vm3, -1.767767e+19, %v818_v12  ;;  %v2348_v15 = vpop.f32.mrb[3].mxu0  ;;  %v2353_v16 = vpop.f32.mrb[13].mxu1  ;;  %v1059_v19 = vsel %vm2987_vm4, -1.767767e+19, %v892_v13 }
 0x290   :  { %v1074_v17 = vsel %vm451_vm2, %v1058_v14, -inf  ;;  %v1077_v27 = vsel %vm451_vm2, %v1059_v19, -inf }
 0x291   :  { %1075 = vmax.xlane.f32.xlu1 %v1074_v17  ;;  %1072 = vmax.xlane.f32.xlu0 %v1071_v18 }
 0x292   :  { %v966_v20 = vpop.f32.mrb[4].mxu0 }
 0x293   :  { %v1060_v21 = vsel %vm2980_vm3, -1.767767e+19, %v966_v20  ;;  %v2358_v25 = vpop.f32.mrb[5].mxu0 }
 0x294   :  { %v1080_v26 = vsel %vm451_vm2, %v1060_v21, -inf }
 0x295   :  { %1081 = vmax.xlane.f32.xlu1 %v1080_v26  ;;  %1078 = vmax.xlane.f32.xlu0 %v1077_v27 }
 0x296   :  { %v1040_v28 = vpop.f32.mrb[14].mxu1 }
 0x297   :  { %v1061_v29 = vsel %vm2987_vm4, -1.767767e+19, %v1040_v28  ;;  %v2363_v30 = vpop.f32.mrb[15].mxu1 }
 0x298   :  { %v1083_v31 = vsel %vm451_vm2, %v1061_v29, -inf }
 0x299   :  { %1084 = vmax.xlane.f32.xlu0 %v1083_v31 }
 0x2a4   :  { %v1064_v34 = vpop.xlane.xlu0 %1063 }
 0x2a5   :  { %v1086_v35 = vsub.f32 %v1054_v61, %v1064_v34 }
 0x2a6   :  { %433 = vrot.lane.b32.xlu1 %v2963_v53, %s2687_s7 }
 0x2a7   :  { %v1094_v37 = vmul.f32 1.442695, %v1086_v35 }
 0x2a8   :  { %v1067_v32 = vpop.xlane.xlu1 %1066 }
 0x2a9   :  { %v1087_v33 = vsub.f32 %v1055_v2, %v1067_v32 }
 0x2aa   :  { %439 = vrot.lane.b32.xlu1 %v2963_v53, %s2688_s30 }
 0x2ab   :  { %v1096_v36 = vmul.f32 1.442695, %v1087_v33 }
 0x2ad   :  { %2546 = vpow2.f32 %v1096_v36 }
 0x2ae   :  { %441 = vrot.lane.b32.xlu1 %v2971_v55, %s2688_s30  ;;  %2548 = vpow2.f32 %v1094_v37 }
 0x2af   :  { %435 = vrot.lane.b32.xlu0 %v2971_v55, %s2687_s7  ;;  %s2692_s7 = smov [#allocation10]  }
 0x2b0   :  { %s2150_s30 = sshll.u32 %s2692_s7, 4  ;;  %s2151_s30 = int_to_ptr.vmem [resolvable:$true] %s2150_s30 }
 0x2b1   :  { %s2652_s5 = scalar_lea.vmem %s2151_s30, 256  ;;  %p2657_p11 = scmp.lt.s32.totalorder %s2151_s30, %s2151_s30 }
 0x2b2   :  { %p2653_p10 = scmp.ne.s32.totalorder %s2151_s30, %s2652_s5  ;;  %p2658_p12 = scmp.lt.s32.totalorder %s2652_s5, %s2652_s5 }
 0x2b4   :  { %p2659_p13 = por %p2658_p12, %p2657_p11 }
 0x2b6   :  { %p2660_p0 = pnand %p2659_p13, %p2653_p10 }
 0x2b7   :  { %v2547_v38 = vpop.eup %2546 }
 0x2b8   :  { %v1113_v39 = vsel %vm451_vm2, %v2547_v38, 0.0  ;;  %v2549_v40 = vpop.eup %2548 }
 0x2b9   :  { %v1110_v41 = vsel %vm451_vm2, %v2549_v40, 0.0 }
 0x2ce   :  { %1114 = vadd.xlane.f32.xlu0 %v1113_v39 }
 0x2d2   :  { %1111 = vadd.xlane.f32.xlu1 %v1110_v41 }
 0x31a   :  { %v1070_v42 = vpop.xlane.xlu0 %1069 }
 0x31b   :  { %v1088_v43 = vsub.f32 %v1056_v8, %v1070_v42 }
 0x31d   :  { %v1098_v44 = vmul.f32 1.442695, %v1088_v43 }
 0x31e   :  { %v1076_v45 = vpop.xlane.xlu1 %1075  ;;  %v1073_v46 = vpop.xlane.xlu0 %1072 }
 0x31f   :  { %2550 = vpow2.f32 %v1098_v44  ;;  %v1090_v47 = vsub.f32 %v1058_v14, %v1076_v45  ;;  %v1089_v48 = vsub.f32 %v1057_v11, %v1073_v46  ;;  %v1766_v45 = vld [vmem:[%s3203_s10] sm:$0xff]  ;;  %v1767_v46 = vld [vmem:[%s3203_s10 + $0x8] sm:$0xff] }
 0x321   :  { %v1102_v49 = vmul.f32 1.442695, %v1090_v47  ;;  %v1100_v50 = vmul.f32 1.442695, %v1089_v48  ;;  %v2485_v47 = vpack.c.bf16 %v1767_v46, %v1766_v45  ;;  %v1769_v48 = vld [vmem:[%s3203_s10 + $0x18] sm:$0xff]  ;;  %v2005_v45 = vld [vmem:[%s3209_s16 + $0x30] sm:$0xff] }
 0x322   :  { %v1082_v51 = vpop.xlane.xlu1 %1081  ;;  %v1079_v52 = vpop.xlane.xlu0 %1078  ;;  %v2006_v46 = vld [vmem:[%s3209_s16 + $0x38] sm:$0xff] }
 0x323   :  { %2552 = vpow2.f32 %v1102_v49  ;;  %v1092_v54 = vsub.f32 %v1060_v21, %v1082_v51  ;;  %v1091_v56 = vsub.f32 %v1059_v19, %v1079_v52 }
 0x324   :  { %2554 = vpow2.f32 %v1100_v50 }
 0x325   :  { %v1106_v57 = vmul.f32 1.442695, %v1092_v54  ;;  %v1104_v58 = vmul.f32 1.442695, %v1091_v56 }
 0x326   :  { %v1085_v59 = vpop.xlane.xlu0 %1084  ;;  %v434_v10 = vpop.permute.xlu1 %433 }
 0x327   :  { %2556 = vpow2.f32 %v1106_v57  ;;  %v1093_v60 = vsub.f32 %v1061_v29, %v1085_v59 }
 0x328   :  { %2558 = vpow2.f32 %v1104_v58 }
 0x329   :  { %v2551_v61 = vpop.eup %2550  ;;  %v1108_v62 = vmul.f32 1.442695, %v1093_v60 }
 0x32a   :  { %v1116_v63 = vsel %vm451_vm2, %v2551_v61, 0.0  ;;  %v440_v11 = vpop.permute.xlu1 %439  ;;  %v436_v12 = vpop.permute.xlu0 %435 }
 0x32b   :  { %2560 = vpow2.f32 %v1108_v62  ;;  %1117 = vadd.xlane.f32.xlu1 %v1116_v63 }
 0x32d   :  { %v2553_v0 = vpop.eup %2552 }
 0x32e   :  { %v2555_v1 = vpop.eup %2554  ;;  %v1122_v2 = vsel %vm451_vm2, %v2553_v0, 0.0  ;;  %v442_v13 = vpop.permute.xlu1 %441 }
 0x32f   :  { %1123 = vadd.xlane.f32.xlu1 %v1122_v2  ;;  %v1119_v3 = vsel %vm451_vm2, %v2555_v1, 0.0 }
 0x330   :  { %1120 = vadd.xlane.f32.xlu0 %v1119_v3 }
 0x331   :  { %v2557_v4 = vpop.eup %2556 }
 0x332   :  { %v2559_v5 = vpop.eup %2558  ;;  %v1128_v6 = vsel %vm451_vm2, %v2557_v4, 0.0 }
 0x333   :  { %1129 = vadd.xlane.f32.xlu1 %v1128_v6  ;;  %v1125_v7 = vsel %vm451_vm2, %v2559_v5, 0.0 }
 0x334   :  { %1126 = vadd.xlane.f32.xlu0 %v1125_v7 }
 0x335   :  { %v3027_v8 = vpop.eup %2560 }
 0x336   :  { %v1131_v9 = vsel %vm451_vm2, %v3027_v8, 0.0 }
 0x338   :  { %1132 = vadd.xlane.f32.xlu0 %v1131_v9 }
 0x344   :  { %447 = vrot.lane.b32.xlu1 %v2971_v55, %s2689_s9 }
 0x34e   :  { %445 = vrot.lane.b32.xlu0 %v2963_v53, %s2689_s9 }
 0x35b   :  { %v1115_v14 = vpop.xlane.xlu0 %1114 }
 0x35c   :  { %2562 = vrcp.f32 %v1115_v14 }
 0x35f   :  { %v1112_v15 = vpop.xlane.xlu1 %1111 }
 0x360   :  { %2564 = vrcp.f32 %v1112_v15 }
 0x366   :  { %v2563_v16 = vpop.eup %2562 }
 0x367   :  { %v1143_v17 = vmul.f32 %v2563_v16, %v2547_v38 }
 0x369   :  { %2372 = vmatmul.mubr.msk.f32.vlgmr.msra.gmra.mrb[16].mxu1 %vm451_vm2, %v1143_v17 }
 0x36a   :  { %v2565_v18 = vpop.eup %2564  ;;  %2380 = vmatpush3.msra.mxu1 %v436_v12  ;;  %2381 = vmatprep.mubr.msk.f32.mxu1 %vm2686_vm1, %v2685_v24  ;;  %v2196_v12 = vld [vmem:[%s3204_s11] ss:$0 sm:$0xff] }
 0x36b   :  { %v1142_v55 = vmul.f32 %v2565_v18, %v2549_v40  ;;  %2389 = vmatprep.subr.mxu1 %v2685_v24 }
 0x36d   :  { %2367 = vmatmul.mubr.msk.f32.vlgmr.msra.gmra.mrb[6].mxu0 %vm451_vm2, %v1142_v55 }
 0x36e   :  { %2375 = vmatpush3.msra.mxu0 %v434_v10  ;;  %2376 = vmatprep.mubr.msk.f32.mxu0 %vm2686_vm1, %v2685_v24 }
 0x36f   :  { %2384 = vmatprep.subr.mxu0 %v2685_v24 }
 0x3b8   :  { %v1118_v53 = vpop.xlane.xlu1 %1117 }
 0x3b9   :  { %2566 = vrcp.f32 %v1118_v53 }
 0x3bc   :  { %v1124_v19 = vpop.xlane.xlu1 %1123 }
 0x3bd   :  { %2568 = vrcp.f32 %v1124_v19  ;;  %v1121_v20 = vpop.xlane.xlu0 %1120 }
 0x3be   :  { %2570 = vrcp.f32 %v1121_v20 }
 0x3c0   :  { %v1130_v21 = vpop.xlane.xlu1 %1129 }
 0x3c1   :  { %2572 = vrcp.f32 %v1130_v21  ;;  %v1127_v25 = vpop.xlane.xlu0 %1126 }
 0x3c2   :  { %2574 = vrcp.f32 %v1127_v25 }
 0x3c3   :  { %v2567_v26 = vpop.eup %2566 }
 0x3c4   :  { %v1144_v27 = vmul.f32 %v2567_v26, %v2551_v61  ;;  %v448_v38 = vpop.permute.xlu1 %447 }
 0x3c5   :  { %v1133_v28 = vpop.xlane.xlu0 %1132 }
 0x3c6   :  { %2576 = vrcp.f32 %v1133_v28  ;;  %2377 = vmatmul.mubr.msk.f32.vlgmr.msra.gmra.mrb[8].mxu0 %vm451_vm2, %v1144_v27 }
 0x3c7   :  { %v2569_v29 = vpop.eup %2568  ;;  %2385 = vmatpush3.msra.mxu0 %v440_v11  ;;  %2386 = vmatprep.mubr.msk.f32.mxu0 %vm2686_vm1, %v2685_v24 }
 0x3c8   :  { %v2571_v30 = vpop.eup %2570  ;;  %v1146_v31 = vmul.f32 %v2569_v29, %v2553_v0  ;;  %2394 = vmatprep.subr.mxu0 %v2685_v24 }
 0x3c9   :  { %v1145_v32 = vmul.f32 %v2571_v30, %v2555_v1  ;;  %v446_v33 = vpop.permute.xlu0 %445  ;;  %v1905_v30 = vld [vmem:[%s3207_s14] sm:$0xff] }
 0x3ca   :  { %2387 = vmatmul.mubr.msk.f32.vlgmr.msra.gmra.mrb[10].mxu0 %vm451_vm2, %v1146_v31  ;;  %v1906_v31 = vld [vmem:[%s3207_s14 + $0x8] sm:$0xff] }
 0x3cb   :  { %v2573_v34 = vpop.eup %2572  ;;  %2382 = vmatmul.mubr.msk.f32.vlgmr.msra.gmra.mrb[18].mxu1 %vm451_vm2, %v1145_v32  ;;  %2395 = vmatpush3.msra.mxu0 %v446_v33  ;;  %v2493_v32 = vpack.c.bf16 %v1906_v31, %v1905_v30  ;;  %v1907_v33 = vld [vmem:[%s3207_s14 + $0x10] sm:$0xff] }
 0x3cc   :  { %v2575_v35 = vpop.eup %2574  ;;  %v1148_v36 = vmul.f32 %v2573_v34, %v2557_v4  ;;  %2390 = vmatpush3.msra.mxu1 %v442_v13  ;;  %2391 = vmatprep.mubr.msk.f32.mxu1 %vm2686_vm1, %v2685_v24  ;;  %v1908_v34 = vld [vmem:[%s3207_s14 + $0x18] sm:$0xff] }
 0x3cd   :  { %v1147_v37 = vmul.f32 %v2575_v35, %v2559_v5  ;;  %2396 = vmatprep.mubr.msk.f32.mxu0 %vm2686_vm1, %v2685_v24  ;;  %2399 = vmatprep.subr.mxu1 %v2685_v24  ;;  %v2497_v35 = vpack.c.bf16 %v1908_v34, %v1907_v33 }
 0x3ce   :  { %2397 = vmatmul.mubr.msk.f32.vlgmr.msra.gmra.mrb[12].mxu0 %vm451_vm2, %v1148_v36  ;;  %2486 = vmatprep.subr.bf16.mxu0 %v2485_v47  ;;  %v1999_v36 = vld [vmem:[%s3209_s16] sm:$0xff] }
 0x3cf   :  { %2392 = vmatmul.mubr.msk.f32.vlgmr.msra.gmra.mrb[20].mxu1 %vm451_vm2, %v1147_v37  ;;  %2488 = vmatpush3.bf16.msra.mxu0 %v2485_v47  ;;  %v2000_v37 = vld [vmem:[%s3209_s16 + $0x8] sm:$0xff]  ;;  %v2513_v47 = vpack.c.bf16 %v2006_v46, %v2005_v45  ;;  %v2205_v45 = vld [vmem:[%s3211_s18] ss:$0 sm:$0xff] }
 0x3d0   :  { %v2577_v39 = vpop.eup %2576  ;;  %2400 = vmatpush3.msra.mxu1 %v448_v38  ;;  %2401 = vmatprep.mubr.msk.f32.mxu1 %vm2686_vm1, %v2685_v24  ;;  %v1768_v24 = vld [vmem:[%s3203_s10 + $0x10] sm:$0xff] }
 0x3d1   :  { %v1149_v40 = vmul.f32 %v2577_v39, %v3027_v8  ;;  %v2489_v49 = vpack.c.bf16 %v1769_v48, %v1768_v24  ;;  %2494 = vmatprep.subr.bf16.mxu1 %v2493_v32  ;;  %v2001_v38 = vld [vmem:[%s3209_s16 + $0x10] sm:$0xff]  ;;  %v2501_v39 = vpack.c.bf16 %v2000_v37, %v1999_v36  ;;  %v2007_v24 = vld [vmem:[%s3209_s16 + $0x40] sm:$0xff]  ;;  %v2008_v48 = vld [vmem:[%s3209_s16 + $0x48] sm:$0xff] }
 0x3d3   :  { %2402 = vmatmul.mubr.msk.f32.vlgmr.msra.gmra.mrb[22].mxu1 %vm451_vm2, %v1149_v40  ;;  %2490 = vmatprep.subr.bf16.mxu0 %v2489_v49  ;;  %v2002_v40 = vld [vmem:[%s3209_s16 + $0x18] sm:$0xff] }
 0x3d4   :  { %2492 = vmatpush3.bf16.msra.mxu0 %v2489_v49  ;;  %2496 = vmatpush3.bf16.msra.mxu1 %v2493_v32  ;;  %v2517_v49 = vpack.c.bf16 %v2008_v48, %v2007_v24  ;;  %v2206_v48 = vld [vmem:[%s3235_s29] ss:$0 sm:$0xff] }
 0x3d5   :  { %2498 = vmatprep.subr.bf16.mxu1 %v2497_v35  ;;  %2502 = vmatprep.subr.bf16.mxu0 %v2501_v39 }
 0x3d8   :  { %2500 = vmatpush3.bf16.msra.mxu1 %v2497_v35 }
 0x43c   :  { %v1292_v41 = vpop.f32.mrb[16].mxu1 }
 0x43d   :  { %v2373_v42 = vpop.f32.mrb[17].mxu1 }
 0x43e   :  { %v2003_v42 = vld [vmem:[%s3209_s16 + $0x20] sm:$0xff] }
 0x440   :  { %v1219_v43 = vpop.f32.mrb[6].mxu0 }
 0x441   :  { %v2368_v44 = vpop.f32.mrb[7].mxu0 }
 0x499   :  { %v1365_v50 = vpop.f32.mrb[8].mxu0 }
 0x49a   :  { %v2378_v51 = vpop.f32.mrb[9].mxu0  ;;  %1736 = vrot.lane.b32.xlu0 %v1365_v50, %s2683_s21  ;;  %v2009_v50 = vld [vmem:[%s3209_s16 + $0x50] sm:$0xff] }
 0x49b   :  { %v2010_v51 = vld [vmem:[%s3209_s16 + $0x58] sm:$0xff] }
 0x49d   :  { %v1511_v52 = vpop.f32.mrb[10].mxu0 }
 0x49e   :  { %v1438_v54 = vpop.f32.mrb[18].mxu1  ;;  %v2388_v56 = vpop.f32.mrb[11].mxu0  ;;  %1744 = vrot.lane.b32.xlu0 %v1511_v52, %s2690_s8  ;;  %v2521_v52 = vpack.c.bf16 %v2010_v51, %v2009_v50 }
 0x49f   :  { %1738 = vrot.lane.b32.xlu1 %v1438_v54, %s2683_s21  ;;  %v2383_v57 = vpop.f32.mrb[19].mxu1  ;;  %v2011_v54 = vld [vmem:[%s3209_s16 + $0x60] sm:$0xff]  ;;  %v2012_v56 = vld [vmem:[%s3209_s16 + $0x68] sm:$0xff] }
 0x4a0   :  { %v2525_v57 = vpack.c.bf16 %v2012_v56, %v2011_v54 }
 0x4a1   :  { %v1657_v58 = vpop.f32.mrb[12].mxu0 }
 0x4a2   :  { %v1584_v59 = vpop.f32.mrb[20].mxu1  ;;  %1752 = vrot.lane.b32.xlu0 %v1657_v58, %s2691_s4  ;;  %v2398_v60 = vpop.f32.mrb[13].mxu0 }
 0x4a3   :  { %1746 = vrot.lane.b32.xlu1 %v1584_v59, %s2690_s8  ;;  %v2393_v61 = vpop.f32.mrb[21].mxu1 }
 0x4a6   :  { %v1730_v62 = vpop.f32.mrb[22].mxu1 }
 0x4a7   :  { %1754 = vrot.lane.b32.xlu1 %v1730_v62, %s2691_s4  ;;  %v2403_v63 = vpop.f32.mrb[23].mxu1 }
 0x50c   :  { %v1737_v0 = vpop.permute.xlu0 %1736 }
 0x50d   :  { %v1758_v3 = vsel %vm451_vm2, %v1219_v43, %v1737_v0  ;;  %v2004_v43 = vld [vmem:[%s3209_s16 + $0x28] sm:$0xff] }
 0x50e   :  { %v2509_v44 = vpack.c.bf16 %v2004_v43, %v2003_v42 }
 0x510   :  { %v1745_v1 = vpop.permute.xlu0 %1744 }
 0x511   :  { %v1739_v2 = vpop.permute.xlu1 %1738  ;;  %v1761_v4 = vsel %vm1760_vm5, %v1758_v3, %v1745_v1  ;;  %v2199_v1 = vld [vmem:[%s3205_s12] ss:$0 sm:$0xff] }
 0x512   :  { %v1759_v8 = vsel %vm451_vm2, %v1292_v41, %v1739_v2  ;;  %v2505_v41 = vpack.c.bf16 %v2002_v40, %v2001_v38  ;;  %v2200_v3 = vld [vmem:[%s3206_s13] ss:$0 sm:$0xff] }
 0x514   :  { %v1753_v5 = vpop.permute.xlu0 %1752 }
 0x515   :  { %v1764_v6 = vsel %vm1763_vm6, %v1761_v4, %v1753_v5  ;;  %v1747_v7 = vpop.permute.xlu1 %1746 }
 0x516   :  { %2412 = vmatprep.mubr.msk.f32.mxu0 %vm126_vm0, %v1764_v6  ;;  %v1762_v9 = vsel %vm1760_vm5, %v1759_v8, %v1747_v7 }
 0x519   :  { %v1755_v10 = vpop.permute.xlu1 %1754 }
 0x51a   :  { %v1765_v11 = vsel %vm1763_vm6, %v1762_v9, %v1755_v10  ;;  %v2013_v10 = vld [vmem:[%s3209_s16 + $0x70] sm:$0xff] }
 0x51b   :  { %2413 = vmatmul.mubr.msk.f32.vlgmr.msra.gmra.mrb[14].mxu0 %vm126_vm0, %v1765_v11  ;;  %v2014_v11 = vld [vmem:[%s3209_s16 + $0x78] sm:$0xff] }
 0x51c   :  { %2504 = vmatpush3.bf16.msra.mxu0 %v2501_v39 }
 0x51d   :  { %2506 = vmatprep.subr.bf16.mxu0 %v2505_v41 }
 0x520   :  { %2508 = vmatpush3.bf16.msra.mxu0 %v2505_v41 }
 0x521   :  { %2510 = vmatprep.subr.bf16.mxu0 %v2509_v44 }
 0x524   :  { %2512 = vmatpush3.bf16.msra.mxu0 %v2509_v44 }
 0x525   :  { %2514 = vmatprep.subr.bf16.mxu0 %v2513_v47 }
 0x528   :  { %2516 = vmatpush3.bf16.msra.mxu0 %v2513_v47 }
 0x529   :  { %2518 = vmatprep.subr.bf16.mxu0 %v2517_v49 }
 0x52c   :  { %2520 = vmatpush3.bf16.msra.mxu0 %v2517_v49 }
 0x52d   :  { %2522 = vmatprep.subr.bf16.mxu0 %v2521_v52 }
 0x530   :  { %2524 = vmatpush3.bf16.msra.mxu0 %v2521_v52 }
 0x531   :  { %2526 = vmatprep.subr.bf16.mxu0 %v2525_v57 }
 0x534   :  { %2528 = vmatpush3.bf16.msra.mxu0 %v2525_v57 }
 0x5ee   :  { %v2414_v13 = vpop.f32.mrb[14].mxu0 }
 0x5ef   :  { %v1855_v14 = vadd.f32 %v2414_v13, %v2196_v12  ;;  %v1849_v15 = vpop.f32.mrb[15].mxu0  ;;  %v2201_v13 = vld [vmem:[%s3208_s15] ss:$0 sm:$0xff] }
 0x5f0   :  { %v1850_v16 = vadd.f32 %v2196_v12, %v1849_v15  ;;  %v2529_v12 = vpack.c.bf16 %v2014_v11, %v2013_v10 }
 0x5f1   :  { %v1859_v17 = vadd.f32 %v1855_v14, %v2894_v23 }
 0x5f2   :  { %v1858_v18 = vadd.f32 %v1850_v16, %v2889_v22  ;;  %2530 = vmatprep.subr.bf16.mxu0 %v2529_v12 }
 0x5f3   :  { %v1863_v55 = vsel %vm126_vm0, %v1859_v17, 0.0  ;;  %2532 = vmatpush3.bf16.msra.mxu0 %v2529_v12 }
 0x5f4   :  { %1864 = vadd.xlane.f32.xlu1 %v1863_v55  ;;  %v1860_v53 = vsel %vm126_vm0, %v1858_v18, 0.0 }
 0x5f5   :  { %1861 = vadd.xlane.f32.xlu0 %v1860_v53  ;;  %v2204_v53 = vld [vmem:[%s3210_s17] ss:$0 sm:$0xff] }
 0x681   :  { %v1865_v19 = vpop.xlane.xlu1 %1864 }
 0x682   :  { %v1868_v20 = vmul.f32 0.03125, %v1865_v19  ;;  %v1862_v21 = vpop.xlane.xlu0 %1861 }
 0x683   :  { %v1867_v25 = vmul.f32 0.03125, %v1862_v21 }
 0x684   :  { %v3085_v26 = vsub.f32 %v1859_v17, %v1868_v20 }
 0x685   :  { %v1869_v27 = vsub.f32 %v1858_v18, %v1867_v25 }
 0x686   :  { %v1872_v23 = vmul.f32 %v3085_v26, %v3085_v26 }
 0x687   :  { %v1871_v28 = vmul.f32 %v1869_v27, %v1869_v27 }
 0x688   :  { %v1876_v22 = vsel %vm126_vm0, %v1872_v23, 0.0 }
 0x689   :  { %v1873_v29 = vsel %vm126_vm0, %v1871_v28, 0.0 }
 0x68a   :  { %1874 = vadd.xlane.f32.xlu0 %v1873_v29 }
 0x68e   :  { %1877 = vadd.xlane.f32.xlu0 %v1876_v22 }
 0x717   :  { %v1875_v58 = vpop.xlane.xlu0 %1874 }
 0x718   :  { %v1879_v59 = vmul.f32 0.03125, %v1875_v58 }
 0x71a   :  { %v1881_v60 = vadd.f32 1e-05, %v1879_v59 }
 0x71b   :  { %v1878_v61 = vpop.xlane.xlu0 %1877 }
 0x71c   :  { %2578 = vrsqrt.f32 %v1881_v60  ;;  %v1880_v62 = vmul.f32 0.03125, %v1878_v61 }
 0x71e   :  { %v1882_v63 = vadd.f32 1e-05, %v1880_v62 }
 0x720   :  { %2580 = vrsqrt.f32 %v1882_v63 }
 0x726   :  { %v2579_v0 = vpop.eup %2578 }
 0x727   :  { %v1885_v2 = vmul.f32 %v2579_v0, %v1869_v27 }
 0x729   :  { %v1894_v4 = vmul.f32 %v2199_v1, %v1885_v2 }
 0x72a   :  { %v2581_v5 = vpop.eup %2580 }
 0x72b   :  { %v1886_v6 = vmul.f32 %v2581_v5, %v3085_v26  ;;  %v1903_v7 = vadd.f32 %v2200_v3, %v1894_v4 }
 0x72d   :  { %v1895_v8 = vmul.f32 %v2199_v1, %v1886_v6  ;;  %2423 = vmatprep.mubr.msk.f32.mxu1 %vm126_vm0, %v1903_v7 }
 0x72f   :  { %v1904_v9 = vadd.f32 %v2200_v3, %v1895_v8 }
 0x731   :  { %2424 = vmatmul.mubr.msk.f32.vlgmr.msra.gmra.mrb[24].mxu1 %vm126_vm0, %v1904_v9 }
 0x804   :  { %v2425_v14 = vpop.f32.mrb[24].mxu1 }
 0x805   :  { %v1994_v15 = vadd.f32 %v2425_v14, %v2201_v13  ;;  %v1988_v16 = vpop.f32.mrb[25].mxu1 }
 0x806   :  { %v1989_v17 = vadd.f32 %v2201_v13, %v1988_v16 }
 0x807   :  { %v1998_v55 = vmax.f32 %v1994_v15, 0.0 }
 0x808   :  { %v1997_v18 = vmax.f32 %v1989_v17, 0.0 }
 0x80a   :  { %2458 = vmatprep.mubr.f32.mxu0 %v1997_v18 }
 0x80b   :  { %2459 = vmatmul.mubr.f32.vlgmr.msra.gmra.mrb[16].mxu0 %v1998_v55 }
 0x8de   :  { %v2460_v19 = vpop.f32.mrb[16].mxu0 }
 0x8df   :  { %v2094_v20 = vadd.f32 %v2460_v19, %v2204_v53  ;;  %v2088_v21 = vpop.f32.mrb[17].mxu0 }
 0x8e0   :  { %v2089_v25 = vadd.f32 %v2204_v53, %v2088_v21 }
 0x8e1   :  { %v2098_v26 = vadd.f32 %v2094_v20, %v1904_v9 }
 0x8e2   :  { %v2097_v27 = vadd.f32 %v2089_v25, %v1903_v7 }
 0x8e3   :  { %v2102_v28 = vsel %vm126_vm0, %v2098_v26, 0.0 }
 0x8e4   :  { %2103 = vadd.xlane.f32.xlu0 %v2102_v28  ;;  %v2099_v29 = vsel %vm126_vm0, %v2097_v27, 0.0 }
 0x8e5   :  { %2100 = vadd.xlane.f32.xlu1 %v2099_v29 }
 0x971   :  { %v2104_v23 = vpop.xlane.xlu0 %2103 }
 0x972   :  { %v2106_v22 = vmul.f32 0.03125, %v2104_v23  ;;  %v2101_v30 = vpop.xlane.xlu1 %2100 }
 0x973   :  { %v2105_v31 = vmul.f32 0.03125, %v2101_v30 }
 0x974   :  { %v2108_v32 = vsub.f32 %v2098_v26, %v2106_v22 }
 0x975   :  { %v2107_v33 = vsub.f32 %v2097_v27, %v2105_v31 }
 0x976   :  { %v2110_v34 = vmul.f32 %v2108_v32, %v2108_v32 }
 0x977   :  { %v2109_v35 = vmul.f32 %v2107_v33, %v2107_v33 }
 0x978   :  { %v2114_v36 = vsel %vm126_vm0, %v2110_v34, 0.0 }
 0x979   :  { %2115 = vadd.xlane.f32.xlu0 %v2114_v36  ;;  %v2111_v37 = vsel %vm126_vm0, %v2109_v35, 0.0 }
 0x97a   :  { %2112 = vadd.xlane.f32.xlu1 %v2111_v37 }
 0xa06   :  { %v2116_v38 = vpop.xlane.xlu0 %2115 }
 0xa07   :  { %v2118_v39 = vmul.f32 0.03125, %v2116_v38  ;;  %v2113_v40 = vpop.xlane.xlu1 %2112 }
 0xa08   :  { %v2117_v41 = vmul.f32 0.03125, %v2113_v40 }
 0xa09   :  { %v2120_v42 = vadd.f32 1e-05, %v2118_v39 }
 0xa0a   :  { %v2119_v43 = vadd.f32 1e-05, %v2117_v41 }
 0xa0b   :  { %2582 = vrsqrt.f32 %v2120_v42 }
 0xa0c   :  { %2584 = vrsqrt.f32 %v2119_v43 }
 0xa15   :  { %v2583_v44 = vpop.eup %2582 }
 0xa16   :  { %v2585_v46 = vpop.eup %2584  ;;  %v2124_v47 = vmul.f32 %v2583_v44, %v2108_v32 }
 0xa17   :  { %v2123_v24 = vmul.f32 %v2585_v46, %v2107_v33 }
 0xa18   :  { %v2133_v49 = vmul.f32 %v2205_v45, %v2124_v47 }
 0xa19   :  { %v2132_v50 = vmul.f32 %v2205_v45, %v2123_v24 }
 0xa1a   :  { %v2142_v51 = vadd.f32 %v2206_v48, %v2133_v49 }
 0xa1b   :  { %v2141_v52 = vadd.f32 %v2206_v48, %v2132_v50 }
 0xa1c   :  { %2144 = vst.msk [vmem:[#allocation10 + $0x8] sm:$0xff] %vm126_vm0, %v2142_v51 }
 0xa1d   :  { %2143 = vst.msk [vmem:[#allocation10] sm:$0xff] %vm126_vm0, %v2141_v52 }
 0xa1e   :  { %2663 = shalt.err (!%p2660_p0)
}
 0xa1f   :  { %s3236_s9 = sld [smem:[#allocation20_spill]] }
 0xa25   :  { %s2664_s26 = scalar_lea.hbm %s3236_s9, 256 }
 0xa26   :  { %p2665_p1 = scmp.ne.s32.totalorder %s3236_s9, %s2664_s26  ;;  %p2668_p2 = scmp.lt.u32.totalorder %s2664_s26, %s3236_s9 }
 0xa28   :  { %p2670_p3 = pnand %p2668_p2, %p2665_p1 }
 0xa2a   :  { %2673 = shalt.err (!%p2670_p3)
}
 0xa2b   :  { %2156 = dma.vmem_to_hbm [thread:$0]  %s2151_s30, 256, %s3236_s9, [#allocation6], %s2682_s0, %s2682_s0, %s2683_s21  }
 0xa2c   :  { %2678 = dma.done.wait [#allocation6], 256  }
 0xa2d   :  { %2679 = vsyncadd [#allocation6], 4294967040 }
 0xa2e   :  { %2160 = vsyncpa [#allocation5], 1 }
 0xa2f   :  { %2161 = vsyncpa [#allocation8], 1 }
 0xa30   :  { %2162 = vsyncpa [#allocation6], 1 }

</bundles_post_ra>
